<compile_context>
chip_gen: v7x
topology: tpu7x:2x2x1
jax: 0.10.0
libtpu: 0.0.40
codegen_flags: <defaults>
</compile_context>

<pallas_src>
import functools

import jax
import jax.numpy as jnp
import numpy as np
from jax import lax
from jax.experimental import pallas as pl
from jax.experimental.pallas import tpu as pltpu

EPS = 1e-8
_LOG_EPS = float(np.log(EPS))   # log(eps) for non-matching pairs (compile-time const)
_NEG_INF = -1e30                # finite "-inf" for padded / dummy class logits


def _round_up(x, m):
    return ((x + m - 1) // m) * m


def _cmp_loss_kernel(*refs, batch, num_classes, tile_c, tiles_per_core,
                     is_cmpc, is_cmpm, needs_class_mask):
    B = batch
    it = iter(refs)
    lab2_ref = next(it)                              # (2B, 1) int32, labels stacked twice
    lab_row_ref = next(it) if is_cmpm else None      # (1, B) int32
    text_ref = next(it)                              # (B, D)
    image_ref = next(it)                             # (B, D)
    w_ref = next(it) if is_cmpc else None            # (D, tile_c) current class tile
    cmpm_ref = next(it)                              # (1, 128) f32 VMEM block (lane-dense)
    if is_cmpc:
        m_ref = next(it)                             # (2B, 1) per-core running max
        l_ref = next(it)                             # (2B, 1) per-core running sum-exp
        t_ref = next(it)                             # (2B, 1) per-core true-class logit
        proj_ref = next(it)                          # (2B, D) scratch: stacked projections

    p = pl.program_id(0)        # parallel class-split axis (megacore on v7x)
    c = pl.program_id(1)        # class-tile reduction axis ("arbitrary")

    def _norms():
        text = text_ref[...].astype(jnp.float32)
        image = image_ref[...].astype(jnp.float32)
        # Row L2 normalization via rsqrt (EUP slot) instead of sqrt + divide.
        text_n = text * lax.rsqrt(jnp.sum(text * text, axis=1, keepdims=True))
        image_n = image * lax.rsqrt(jnp.sum(image * image, axis=1, keepdims=True))
        return text, image, text_n, image_n

    # --------------------------------------------- per-core CMPC init (c == 0)
    if is_cmpc:
        @pl.when(c == 0)
        def _init_cmpc():
            text, image, text_n, image_n = _norms()
            s_img = jnp.sum(image * text_n, axis=1, keepdims=True)
            s_txt = jnp.sum(text * image_n, axis=1, keepdims=True)
            dt = proj_ref.dtype
            # Stacked projections (2B, D): rows [0,B) image_proj_text,
            # rows [B,2B) text_proj_image.  Two slice stores, no concat temp.
            proj_ref[0:B, :] = (s_img * text_n).astype(dt)
            proj_ref[B:2 * B, :] = (s_txt * image_n).astype(dt)
            m_ref[...] = jnp.full((2 * B, 1), _NEG_INF, jnp.float32)
            l_ref[...] = jnp.zeros((2 * B, 1), jnp.float32)
            t_ref[...] = jnp.zeros((2 * B, 1), jnp.float32)

    # ---------------------------------------------- CMPM (core 0, first step)
    if is_cmpm:
        @pl.when((p == 0) & (c == 0))
        def _cmpm():
            text, image, text_n, image_n = _norms()
            lab_col = lab2_ref[0:B, :]                # (B, 1)
            lab_row = lab_row_ref[...]                # (1, B)
            mask = (lab_col - lab_row) == 0           # (B, B) label-equality mask
            mask_f = mask.astype(jnp.float32)
            # torch divides column j by the norm of *row* j; the mask is
            # symmetric, so per-column counts reproduce that broadcast exactly.
            count = jnp.sum(mask_f, axis=0, keepdims=True)        # (1, B)
            log_pos = jnp.log(lax.rsqrt(count) + EPS)             # B logs, not B^2
            log_mask = jnp.where(mask, log_pos, _LOG_EPS)         # (B, B)

            dn = (((1,), (1,)), ((), ()))
            ipt_sim = lax.dot_general(image, text_n, dn,
                                      preferred_element_type=jnp.float32)
            tpi_sim = lax.dot_general(text, image_n, dn,
                                      preferred_element_type=jnp.float32)

            def _term(sim):
                m = jnp.max(sim, axis=1, keepdims=True)
                z = sim - m
                e = jnp.exp(z)
                s = jnp.sum(e, axis=1, keepdims=True)
                pred = e / s                          # exact reciprocal (accuracy)
                logp = z - jnp.log(s)                 # log_softmax
                return jnp.sum(pred * (logp - log_mask))

            val = (_term(ipt_sim) + _term(tpi_sim)) * (1.0 / B)
            cmpm_ref[...] = jnp.full(cmpm_ref.shape, val, jnp.float32)

        @pl.when((p != 0) & (c == 0))
        def _cmpm_zero():
            cmpm_ref[...] = jnp.zeros(cmpm_ref.shape, jnp.float32)
    else:
        @pl.when(c == 0)
        def _cmpm_zero_all():
            cmpm_ref[...] = jnp.zeros(cmpm_ref.shape, jnp.float32)

    # --------------------------------------------- CMPC: one class tile / step
    if is_cmpc:
        w_tile = w_ref[...]                                           # (D, tile_c)
        wf = w_tile.astype(jnp.float32)
        col_ss = jnp.sum(wf * wf, axis=0, keepdims=True)              # (1, tile_c)

        gt = p * tiles_per_core + c                                    # global tile id
        cls = gt * tile_c + lax.broadcasted_iota(jnp.int32, (1, tile_c), 1)

        # One (2B, D) x (D, tile_c) MXU matmul covers both modalities' logits;
        # W is never normalized/materialized: the column-norm scaling moves
        # after the matmul (O(B*C) multiplies instead of O(D*C) divides).
        logits = jnp.dot(proj_ref[...], w_tile,
                         preferred_element_type=jnp.float32)
        if needs_class_mask:
            valid = cls < num_classes                                  # (1, tile_c)
            inv_cn = lax.rsqrt(col_ss + (1.0 - valid.astype(jnp.float32)))
            logits = jnp.where(valid, logits * inv_cn, _NEG_INF)
        else:
            logits = logits * lax.rsqrt(col_ss)

        one_hot = (cls == lab2_ref[...]).astype(jnp.float32)           # (2B, tile_c)

        # Online logsumexp across this core's class tiles.
        m_prev = m_ref[...]
        m_new = jnp.maximum(m_prev, jnp.max(logits, axis=1, keepdims=True))
        l_ref[...] = (l_ref[...] * jnp.exp(m_prev - m_new)
                      + jnp.sum(jnp.exp(logits - m_new), axis=1, keepdims=True))
        t_ref[...] = t_ref[...] + jnp.sum(one_hot * logits, axis=1, keepdims=True)
        m_ref[...] = m_new


def cmp_loss_pallas(text, image, labels, W, is_cmpm=True, is_cmpc=True,
                    tile_c=512, class_split=2, cast_w_to_bf16=False):
    """Forward pass of CMPLoss. Returns (loss, cmpc_loss, cmpm_loss)."""
    B, D = text.shape
    C = W.shape[1]

    if not (is_cmpm or is_cmpc):
        zero = jnp.float32(0.0)
        return zero, zero, zero

    text = text.astype(jnp.float32)
    image = image.astype(jnp.float32)
    labels_i = labels.astype(jnp.int32)
    lab2 = jnp.concatenate([labels_i, labels_i]).reshape(2 * B, 1)

    if is_cmpc:
        if cast_w_to_bf16 and W.dtype != jnp.bfloat16:
            # NOTE: only a net win when W (or its bf16 copy) is reused across
            # calls; halves the dominant W HBM stream, f32 MXU accumulation.
            W = W.astype(jnp.bfloat16)
        tile_c = max(128, min(tile_c, _round_up(C, 128)))
        n_ct = pl.cdiv(C, tile_c)
        P = max(1, min(class_split, n_ct))
        tiles_per_core = pl.cdiv(n_ct, P)
        P = pl.cdiv(n_ct, tiles_per_core)              # drop fully-dummy cores
        has_dummy = tiles_per_core * P != n_ct
        needs_class_mask = (C % tile_c != 0) or has_dummy
        if has_dummy:
            last = n_ct - 1
            w_index = lambda p, c: (0, jnp.minimum(p * tiles_per_core + c, last))
        else:
            w_index = lambda p, c: (0, p * tiles_per_core + c)
        w_item = W.dtype.itemsize
    else:
        tile_c, n_ct, P, tiles_per_core = 128, 1, 1, 1
        needs_class_mask = False
        w_item = 4

    inputs = [lab2]
    in_specs = [pl.BlockSpec((2 * B, 1), lambda p, c: (0, 0))]
    if is_cmpm:
        inputs.append(labels_i.reshape(1, B))
        in_specs.append(pl.BlockSpec((1, B), lambda p, c: (0, 0)))
    inputs += [text, image]
    in_specs += [pl.BlockSpec((B, D), lambda p, c: (0, 0)),
                 pl.BlockSpec((B, D), lambda p, c: (0, 0))]

    scratch = []
    if is_cmpc:
        inputs.append(W)                               # streamed unpadded class tiles
        in_specs.append(pl.BlockSpec((D, tile_c), w_index))
        scratch = [pltpu.VMEM((2 * B, D), W.dtype)]    # stacked projections

    out_shapes = [jax.ShapeDtypeStruct((P, 1, 128), jnp.float32)]      # cmpm (lane-dense)
    out_specs = [pl.BlockSpec((None, 1, 128), lambda p, c: (p, 0, 0))]
    if is_cmpc:
        state = jax.ShapeDtypeStruct((P, 2 * B, 1), jnp.float32)
        out_shapes += [state, state, state]            # per-core m, l, t partial LSE
        out_specs += [pl.BlockSpec((None, 2 * B, 1), lambda p, c: (p, 0, 0))] * 3

    # VMEM budget: inputs, double-buffered W tile, projections, per-tile
    # temporaries, and the CMPM (B, B) temporaries; clamped with headroom
    # under the physical capacity (v7x only has 64 MiB).
    vmem_bytes = (4 * 2 * 2 * B * D
                  + ((3 * D * tile_c * w_item) + (2 * B * D * w_item)
                     + (6 * 2 * B * tile_c * 4) + (D * tile_c * 4) if is_cmpc else 0)
                  + (12 * B * B * 4 if is_cmpm else 0)
                  + 64 * B * 4 + (1 << 20))
    try:
        cap = int(pltpu.get_tpu_info().vmem_capacity_bytes) * 3 // 4
    except Exception:
        cap = 48 * 1024 * 1024
    vmem_limit = int(min(max(int(vmem_bytes * 1.5), 16 * 1024 * 1024), cap))

    kernel = functools.partial(_cmp_loss_kernel, batch=B, num_classes=C,
                               tile_c=tile_c, tiles_per_core=tiles_per_core,
                               is_cmpc=is_cmpc, is_cmpm=is_cmpm,
                               needs_class_mask=needs_class_mask)

    outs = pl.pallas_call(
        kernel,
        grid=(P, tiles_per_core),
        in_specs=in_specs,
        out_specs=tuple(out_specs),
        out_shape=tuple(out_shapes),
        scratch_shapes=scratch,
        compiler_params=pltpu.CompilerParams(
            dimension_semantics=("parallel", "arbitrary"),
            vmem_limit_bytes=vmem_limit),
    )(*inputs)

    cmpm_loss = outs[0][0, 0, 0] if is_cmpm else jnp.float32(0.0)

    if is_cmpc:
        m_out, l_out, t_out = outs[1], outs[2], outs[3]
        # Merge the per-core partial logsumexp states, then the cross-entropy.
        m = jnp.max(m_out, axis=0)                                   # (2B, 1)
        l = jnp.sum(l_out * jnp.exp(m_out - m), axis=0)              # (2B, 1)
        t = jnp.sum(t_out, axis=0)                                   # (2B, 1)
        ce = m + jnp.log(l) - t                                      # (2B, 1)
        cmpc_loss = jnp.sum(ce) * (1.0 / B)
    else:
        cmpc_loss = jnp.float32(0.0)

    loss = cmpc_loss + cmpm_loss
    return loss, cmpc_loss, cmpm_loss


def xavier_uniform(key, feature_dim, num_classes):
    # torch.nn.init.xavier_uniform_ on a (feature_dim, num_classes) tensor.
    bound = float(np.sqrt(6.0 / (num_classes + feature_dim)))
    return jax.random.uniform(key, (feature_dim, num_classes), jnp.float32,
                              minval=-bound, maxval=bound)


def _reference(text, image, labels, W):
    """Pure-JAX reference mirroring the PyTorch module (both flags True)."""
    B = text.shape[0]
    C = W.shape[1]
    image_norm = image / jnp.linalg.norm(image, axis=1, keepdims=True)
    text_norm = text / jnp.linalg.norm(text, axis=1, keepdims=True)

    # CMPC
    w_norm = W / jnp.linalg.norm(W, axis=0, keepdims=True)
    ipt = jnp.sum(image * text_norm, axis=1, keepdims=True) * text_norm
    tpi = jnp.sum(text * image_norm, axis=1, keepdims=True) * image_norm
    il = ipt @ w_norm
    tl = tpi @ w_norm
    oh = jax.nn.one_hot(labels, C, dtype=jnp.float32)
    ce = lambda lg: -jnp.mean(jnp.sum(oh * jax.nn.log_softmax(lg, axis=1), axis=1))
    cmpc = ce(il) + ce(tl)

    # CMPM
    mask = (labels[:, None] - labels[None, :]) == 0
    mask_f = mask.astype(jnp.float32)
    mask_norm = mask_f / jnp.linalg.norm(mask_f, axis=1)   # same broadcast as torch
    ipt_sim = image @ text_norm.T
    tpi_sim = text @ image_norm.T

    def term(sim):
        pred = jax.nn.softmax(sim, axis=1)
        loss = pred * (jax.nn.log_softmax(sim, axis=1) - jnp.log(mask_norm + EPS))
        return jnp.mean(jnp.sum(loss, axis=1))

    cmpm = term(ipt_sim) + term(tpi_sim)
    return cmpc + cmpm, cmpc, cmpm


if __name__ == "__main__":
    # Highest matmul precision so kernel and pure-JAX reference agree tightly
    # (both default to fast bf16 MXU passes otherwise).
    jax.config.update("jax_default_matmul_precision", "highest")

    key = jax.random.PRNGKey(0)
    k1, k2, k3, k4 = jax.random.split(key, 4)
    # Deliberately non-aligned small shapes: D=40 (non-multiple of 128),
    # C=300 with tile_c=128 -> 3 class tiles split across class_split=2,
    # exercising the online LSE, the ragged last tile, the dummy-tile mask,
    # the clamped W index_map and the per-core partial-state merge.
    B, D, C = 8, 40, 300

    text = jax.random.normal(k1, (B, D), jnp.float32)
    image = jax.random.normal(k2, (B, D), jnp.float32)
    # Labels drawn from a small range so the CMPM mask has real collisions.
    labels = jax.random.randint(k3, (B,), 0, 5, dtype=jnp.int32)
    W = xavier_uniform(k4, D, C)

    loss, cmpc_loss, cmpm_loss = cmp_loss_pallas(text, image, labels, W,
                                                 is_cmpm=True, is_cmpc=True,
                                                 tile_c=128, class_split=2)
    jax.block_until_ready((loss, cmpc_loss, cmpm_loss))

    ref_loss, ref_cmpc, ref_cmpm = _reference(text, image, labels, W)
    assert np.allclose(float(cmpc_loss), float(ref_cmpc), rtol=2e-3, atol=1e-4), \
        (float(cmpc_loss), float(ref_cmpc))
    assert np.allclose(float(cmpm_loss), float(ref_cmpm), rtol=2e-3, atol=1e-4), \
        (float(cmpm_loss), float(ref_cmpm))
    assert np.allclose(float(loss), float(ref_loss), rtol=2e-3, atol=1e-4), \
        (float(loss), float(ref_loss))

    print("KERNEL_OK")
</pallas_src>

<mosaic_0001>
module attributes {stable_mosaic.version = 11 : i64} {
  func.func @_cmp_loss_kernel(%arg0: i32, %arg1: i32, %arg2: memref<16x1xi32, #tpu.memory_space<vmem>>, %arg3: memref<1x8xi32, #tpu.memory_space<vmem>>, %arg4: memref<8x40xf32, #tpu.memory_space<vmem>>, %arg5: memref<8x40xf32, #tpu.memory_space<vmem>>, %arg6: memref<40x128xf32, #tpu.memory_space<vmem>>, %arg7: memref<1x1x128xf32, #tpu.memory_space<vmem>>, %arg8: memref<1x16x1xf32, #tpu.memory_space<vmem>>, %arg9: memref<1x16x1xf32, #tpu.memory_space<vmem>>, %arg10: memref<1x16x1xf32, #tpu.memory_space<vmem>>, %arg11: memref<16x40xf32, #tpu.memory_space<vmem>>) attributes {dimension_semantics = [#tpu.dimension_semantics<parallel>, #tpu.dimension_semantics<arbitrary>], iteration_bounds = array<i64: 2, 2>, scalar_prefetch = 0 : i64, scratch_operands = 1 : i64, tpu.core_type = #tpu.core_type<tc>, window_params = [{pipeline_mode = #tpu.pipeline_mode<synchronous>, transform_indices = @transform_0, window_bounds = array<i64: 16, 1>}, {pipeline_mode = #tpu.pipeline_mode<synchronous>, transform_indices = @transform_1, window_bounds = array<i64: 1, 8>}, {pipeline_mode = #tpu.pipeline_mode<synchronous>, transform_indices = @transform_2, window_bounds = array<i64: 8, 40>}, {pipeline_mode = #tpu.pipeline_mode<synchronous>, transform_indices = @transform_3, window_bounds = array<i64: 8, 40>}, {transform_indices = @transform_4, window_bounds = array<i64: 40, 128>}, {transform_indices = @transform_5, window_bounds = array<i64: 1, 1, 128>}, {transform_indices = @transform_6, window_bounds = array<i64: 1, 16, 1>}, {transform_indices = @transform_7, window_bounds = array<i64: 1, 16, 1>}, {transform_indices = @transform_8, window_bounds = array<i64: 1, 16, 1>}]} {
    %c0_i32 = arith.constant 0 : i32
    %0 = arith.cmpi eq, %arg1, %c0_i32 : i32
    %1 = arith.extui %0 : i1 to i32
    %c0_i32_0 = arith.constant 0 : i32
    %2 = arith.cmpi ne, %1, %c0_i32_0 : i32
    scf.if %2 {
      %c0_36 = arith.constant 0 : index
      %c0_37 = arith.constant 0 : index
      %76 = vector.load %arg4[%c0_36, %c0_37] : memref<8x40xf32, #tpu.memory_space<vmem>>, vector<8x40xf32>
      %c0_38 = arith.constant 0 : index
      %c0_39 = arith.constant 0 : index
      %77 = vector.load %arg5[%c0_38, %c0_39] : memref<8x40xf32, #tpu.memory_space<vmem>>, vector<8x40xf32>
      %78 = arith.mulf %76, %76 : vector<8x40xf32>
      %cst_40 = arith.constant dense<0.000000e+00> : vector<8xf32>
      %79 = vector.multi_reduction <add>, %78, %cst_40 [1] : vector<8x40xf32> to vector<8xf32>
      %80 = vector.shape_cast %79 : vector<8xf32> to vector<8x1xf32>
      %81 = math.rsqrt %80 : vector<8x1xf32>
      %82 = vector.broadcast %81 : vector<8x1xf32> to vector<8x40xf32>
      %83 = arith.mulf %76, %82 : vector<8x40xf32>
      %84 = arith.mulf %77, %77 : vector<8x40xf32>
      %cst_41 = arith.constant dense<0.000000e+00> : vector<8xf32>
      %85 = vector.multi_reduction <add>, %84, %cst_41 [1] : vector<8x40xf32> to vector<8xf32>
      %86 = vector.shape_cast %85 : vector<8xf32> to vector<8x1xf32>
      %87 = math.rsqrt %86 : vector<8x1xf32>
      %88 = vector.broadcast %87 : vector<8x1xf32> to vector<8x40xf32>
      %89 = arith.mulf %77, %88 : vector<8x40xf32>
      %90 = arith.mulf %77, %83 : vector<8x40xf32>
      %cst_42 = arith.constant dense<0.000000e+00> : vector<8xf32>
      %91 = vector.multi_reduction <add>, %90, %cst_42 [1] : vector<8x40xf32> to vector<8xf32>
      %92 = vector.shape_cast %91 : vector<8xf32> to vector<8x1xf32>
      %93 = arith.mulf %76, %89 : vector<8x40xf32>
      %cst_43 = arith.constant dense<0.000000e+00> : vector<8xf32>
      %94 = vector.multi_reduction <add>, %93, %cst_43 [1] : vector<8x40xf32> to vector<8xf32>
      %95 = vector.shape_cast %94 : vector<8xf32> to vector<8x1xf32>
      %96 = vector.broadcast %92 : vector<8x1xf32> to vector<8x40xf32>
      %97 = arith.mulf %96, %83 : vector<8x40xf32>
      %c0_44 = arith.constant 0 : index
      %c0_45 = arith.constant 0 : index
      %98 = vector.load %arg11[%c0_44, %c0_45] : memref<16x40xf32, #tpu.memory_space<vmem>>, vector<8x40xf32>
      tpu.vector_store %arg11[%c0_44, %c0_45], %97 {strides = array<i32>} : memref<16x40xf32, #tpu.memory_space<vmem>>, vector<8x40xf32>,
      %99 = vector.broadcast %95 : vector<8x1xf32> to vector<8x40xf32>
      %100 = arith.mulf %99, %89 : vector<8x40xf32>
      %c8 = arith.constant 8 : index
      %c0_46 = arith.constant 0 : index
      %101 = vector.load %arg11[%c8, %c0_46] : memref<16x40xf32, #tpu.memory_space<vmem>>, vector<8x40xf32>
      tpu.vector_store %arg11[%c8, %c0_46], %100 {strides = array<i32>} : memref<16x40xf32, #tpu.memory_space<vmem>>, vector<8x40xf32>,
      %cst_47 = arith.constant -1.000000e+30 : f32
      %102 = vector.broadcast %cst_47 : f32 to vector<16x1xf32>
      %c0_48 = arith.constant 0 : index
      %c0_49 = arith.constant 0 : index
      %c0_50 = arith.constant 0 : index
      %103 = vector.load %arg8[%c0_48, %c0_49, %c0_50] : memref<1x16x1xf32, #tpu.memory_space<vmem>>, vector<1x16x1xf32>
      %104 = vector.shape_cast %103 : vector<1x16x1xf32> to vector<16x1xf32>
      %105 = vector.shape_cast %102 : vector<16x1xf32> to vector<1x16x1xf32>
      tpu.vector_store %arg8[%c0_48, %c0_49, %c0_50], %105 {strides = array<i32>} : memref<1x16x1xf32, #tpu.memory_space<vmem>>, vector<1x16x1xf32>,
      %cst_51 = arith.constant 0.000000e+00 : f32
      %106 = vector.broadcast %cst_51 : f32 to vector<16x1xf32>
      %c0_52 = arith.constant 0 : index
      %c0_53 = arith.constant 0 : index
      %c0_54 = arith.constant 0 : index
      %107 = vector.load %arg9[%c0_52, %c0_53, %c0_54] : memref<1x16x1xf32, #tpu.memory_space<vmem>>, vector<1x16x1xf32>
      %108 = vector.shape_cast %107 : vector<1x16x1xf32> to vector<16x1xf32>
      %109 = vector.shape_cast %106 : vector<16x1xf32> to vector<1x16x1xf32>
      tpu.vector_store %arg9[%c0_52, %c0_53, %c0_54], %109 {strides = array<i32>} : memref<1x16x1xf32, #tpu.memory_space<vmem>>, vector<1x16x1xf32>,
      %cst_55 = arith.constant 0.000000e+00 : f32
      %110 = vector.broadcast %cst_55 : f32 to vector<16x1xf32>
      %c0_56 = arith.constant 0 : index
      %c0_57 = arith.constant 0 : index
      %c0_58 = arith.constant 0 : index
      %111 = vector.load %arg10[%c0_56, %c0_57, %c0_58] : memref<1x16x1xf32, #tpu.memory_space<vmem>>, vector<1x16x1xf32>
      %112 = vector.shape_cast %111 : vector<1x16x1xf32> to vector<16x1xf32>
      %113 = vector.shape_cast %110 : vector<16x1xf32> to vector<1x16x1xf32>
      tpu.vector_store %arg10[%c0_56, %c0_57, %c0_58], %113 {strides = array<i32>} : memref<1x16x1xf32, #tpu.memory_space<vmem>>, vector<1x16x1xf32>,
    } else {
    }
    %c0_i32_1 = arith.constant 0 : i32
    %3 = arith.cmpi eq, %arg0, %c0_i32_1 : i32
    %c0_i32_2 = arith.constant 0 : i32
    %4 = arith.cmpi eq, %arg1, %c0_i32_2 : i32
    %5 = arith.andi %3, %4 : i1
    %6 = arith.extui %5 : i1 to i32
    %c0_i32_3 = arith.constant 0 : i32
    %7 = arith.cmpi ne, %6, %c0_i32_3 : i32
    scf.if %7 {
      %c0_36 = arith.constant 0 : index
      %c0_37 = arith.constant 0 : index
      %76 = vector.load %arg4[%c0_36, %c0_37] : memref<8x40xf32, #tpu.memory_space<vmem>>, vector<8x40xf32>
      %c0_38 = arith.constant 0 : index
      %c0_39 = arith.constant 0 : index
      %77 = vector.load %arg5[%c0_38, %c0_39] : memref<8x40xf32, #tpu.memory_space<vmem>>, vector<8x40xf32>
      %78 = arith.mulf %76, %76 : vector<8x40xf32>
      %cst_40 = arith.constant dense<0.000000e+00> : vector<8xf32>
      %79 = vector.multi_reduction <add>, %78, %cst_40 [1] : vector<8x40xf32> to vector<8xf32>
      %80 = vector.shape_cast %79 : vector<8xf32> to vector<8x1xf32>
      %81 = math.rsqrt %80 : vector<8x1xf32>
      %82 = vector.broadcast %81 : vector<8x1xf32> to vector<8x40xf32>
      %83 = arith.mulf %76, %82 : vector<8x40xf32>
      %84 = arith.mulf %77, %77 : vector<8x40xf32>
      %cst_41 = arith.constant dense<0.000000e+00> : vector<8xf32>
      %85 = vector.multi_reduction <add>, %84, %cst_41 [1] : vector<8x40xf32> to vector<8xf32>
      %86 = vector.shape_cast %85 : vector<8xf32> to vector<8x1xf32>
      %87 = math.rsqrt %86 : vector<8x1xf32>
      %88 = vector.broadcast %87 : vector<8x1xf32> to vector<8x40xf32>
      %89 = arith.mulf %77, %88 : vector<8x40xf32>
      %c0_42 = arith.constant 0 : index
      %c0_43 = arith.constant 0 : index
      %90 = vector.load %arg2[%c0_42, %c0_43] : memref<16x1xi32, #tpu.memory_space<vmem>>, vector<8x1xi32>
      %c0_44 = arith.constant 0 : index
      %c0_45 = arith.constant 0 : index
      %91 = vector.load %arg3[%c0_44, %c0_45] : memref<1x8xi32, #tpu.memory_space<vmem>>, vector<1x8xi32>
      %92 = vector.broadcast %90 : vector<8x1xi32> to vector<8x8xi32>
      %93 = vector.broadcast %91 : vector<1x8xi32> to vector<8x8xi32>
      %94 = arith.subi %92, %93 : vector<8x8xi32>
      %c0_i32_46 = arith.constant 0 : i32
      %95 = vector.broadcast %c0_i32_46 : i32 to vector<8x8xi32>
      %96 = arith.cmpi eq, %94, %95 : vector<8x8xi32>
      %97 = arith.extui %96 : vector<8x8xi1> to vector<8x8xi32>
      %98 = arith.sitofp %97 : vector<8x8xi32> to vector<8x8xf32>
      %cst_47 = arith.constant dense<0.000000e+00> : vector<8xf32>
      %99 = vector.multi_reduction <add>, %98, %cst_47 [0] : vector<8x8xf32> to vector<8xf32>
      %100 = vector.shape_cast %99 : vector<8xf32> to vector<1x8xf32>
      %101 = math.rsqrt %100 : vector<1x8xf32>
      %cst_48 = arith.constant 9.99999993E-9 : f32
      %102 = vector.broadcast %cst_48 : f32 to vector<1x8xf32>
      %103 = arith.addf %101, %102 : vector<1x8xf32>
      %104 = math.log %103 : vector<1x8xf32>
      %cst_49 = arith.constant -18.420681 : f32
      %105 = vector.shape_cast %104 : vector<1x8xf32> to vector<1x8xf32>
      %106 = vector.broadcast %105 : vector<1x8xf32> to vector<8x8xf32>
      %107 = vector.broadcast %cst_49 : f32 to vector<8x8xf32>
      %108 = arith.select %96, %106, %107 : vector<8x8xi1>, vector<8x8xf32>
      %cst_50 = arith.constant dense<0.000000e+00> : vector<8x8xf32>
      %109 = tpu.matmul %77, %83, %cst_50 {dimension_numbers = #tpu.dot_dimension_numbers<[1], [1], [0], [0], [0, 0, 1, 0], [], []>, precision = #tpu.contract_precision<fp32>} : vector<8x40xf32>, vector<8x40xf32>, vector<8x8xf32> -> vector<8x8xf32>
      %cst_51 = arith.constant dense<0.000000e+00> : vector<8x8xf32>
      %110 = tpu.matmul %76, %89, %cst_51 {dimension_numbers = #tpu.dot_dimension_numbers<[1], [1], [0], [0], [0, 0, 1, 0], [], []>, precision = #tpu.contract_precision<fp32>} : vector<8x40xf32>, vector<8x40xf32>, vector<8x8xf32> -> vector<8x8xf32>
      %cst_52 = arith.constant dense<0xFF800000> : vector<8xf32>
      %111 = vector.multi_reduction <maximumf>, %109, %cst_52 [1] : vector<8x8xf32> to vector<8xf32>
      %112 = vector.shape_cast %111 : vector<8xf32> to vector<8x1xf32>
      %113 = vector.broadcast %112 : vector<8x1xf32> to vector<8x8xf32>
      %114 = arith.subf %109, %113 : vector<8x8xf32>
      %115 = math.exp %114 : vector<8x8xf32>
      %cst_53 = arith.constant dense<0.000000e+00> : vector<8xf32>
      %116 = vector.multi_reduction <add>, %115, %cst_53 [1] : vector<8x8xf32> to vector<8xf32>
      %117 = vector.shape_cast %116 : vector<8xf32> to vector<8x1xf32>
      %118 = vector.broadcast %117 : vector<8x1xf32> to vector<8x8xf32>
      %119 = arith.divf %115, %118 : vector<8x8xf32>
      %120 = math.log %117 : vector<8x1xf32>
      %121 = vector.broadcast %120 : vector<8x1xf32> to vector<8x8xf32>
      %122 = arith.subf %114, %121 : vector<8x8xf32>
      %123 = arith.subf %122, %108 : vector<8x8xf32>
      %124 = arith.mulf %119, %123 : vector<8x8xf32>
      %125 = vector.shape_cast %124 : vector<8x8xf32> to vector<1x8x8xf32>
      %cst_54 = arith.constant dense<0.000000e+00> : vector<1xf32>
      %126 = vector.multi_reduction <add>, %125, %cst_54 [1, 2] : vector<1x8x8xf32> to vector<1xf32>
      %127 = vector.shape_cast %126 : vector<1xf32> to vector<1x1x1xf32>
      %128 = vector.extract %127[0, 0, 0] : f32 from vector<1x1x1xf32>
      %cst_55 = arith.constant dense<0xFF800000> : vector<8xf32>
      %129 = vector.multi_reduction <maximumf>, %110, %cst_55 [1] : vector<8x8xf32> to vector<8xf32>
      %130 = vector.shape_cast %129 : vector<8xf32> to vector<8x1xf32>
      %131 = vector.broadcast %130 : vector<8x1xf32> to vector<8x8xf32>
      %132 = arith.subf %110, %131 : vector<8x8xf32>
      %133 = math.exp %132 : vector<8x8xf32>
      %cst_56 = arith.constant dense<0.000000e+00> : vector<8xf32>
      %134 = vector.multi_reduction <add>, %133, %cst_56 [1] : vector<8x8xf32> to vector<8xf32>
      %135 = vector.shape_cast %134 : vector<8xf32> to vector<8x1xf32>
      %136 = vector.broadcast %135 : vector<8x1xf32> to vector<8x8xf32>
      %137 = arith.divf %133, %136 : vector<8x8xf32>
      %138 = math.log %135 : vector<8x1xf32>
      %139 = vector.broadcast %138 : vector<8x1xf32> to vector<8x8xf32>
      %140 = arith.subf %132, %139 : vector<8x8xf32>
      %141 = arith.subf %140, %108 : vector<8x8xf32>
      %142 = arith.mulf %137, %141 : vector<8x8xf32>
      %143 = vector.shape_cast %142 : vector<8x8xf32> to vector<1x8x8xf32>
      %cst_57 = arith.constant dense<0.000000e+00> : vector<1xf32>
      %144 = vector.multi_reduction <add>, %143, %cst_57 [1, 2] : vector<1x8x8xf32> to vector<1xf32>
      %145 = vector.shape_cast %144 : vector<1xf32> to vector<1x1x1xf32>
      %146 = vector.extract %145[0, 0, 0] : f32 from vector<1x1x1xf32>
      %147 = arith.addf %128, %146 : f32
      %cst_58 = arith.constant 1.250000e-01 : f32
      %148 = arith.mulf %147, %cst_58 : f32
      %149 = vector.broadcast %148 : f32 to vector<1x128xf32>
      %c0_59 = arith.constant 0 : index
      %c0_60 = arith.constant 0 : index
      %c0_61 = arith.constant 0 : index
      %150 = vector.load %arg7[%c0_59, %c0_60, %c0_61] : memref<1x1x128xf32, #tpu.memory_space<vmem>>, vector<1x1x128xf32>
      %151 = vector.shape_cast %150 : vector<1x1x128xf32> to vector<1x128xf32>
      %152 = vector.shape_cast %149 : vector<1x128xf32> to vector<1x1x128xf32>
      tpu.vector_store %arg7[%c0_59, %c0_60, %c0_61], %152 {strides = array<i32>} : memref<1x1x128xf32, #tpu.memory_space<vmem>>, vector<1x1x128xf32>,
    } else {
    }
    %c0_i32_4 = arith.constant 0 : i32
    %8 = arith.cmpi ne, %arg0, %c0_i32_4 : i32
    %c0_i32_5 = arith.constant 0 : i32
    %9 = arith.cmpi eq, %arg1, %c0_i32_5 : i32
    %10 = arith.andi %8, %9 : i1
    %11 = arith.extui %10 : i1 to i32
    %c0_i32_6 = arith.constant 0 : i32
    %12 = arith.cmpi ne, %11, %c0_i32_6 : i32
    scf.if %12 {
      %cst_36 = arith.constant 0.000000e+00 : f32
      %76 = vector.broadcast %cst_36 : f32 to vector<1x128xf32>
      %c0_37 = arith.constant 0 : index
      %c0_38 = arith.constant 0 : index
      %c0_39 = arith.constant 0 : index
      %77 = vector.load %arg7[%c0_37, %c0_38, %c0_39] : memref<1x1x128xf32, #tpu.memory_space<vmem>>, vector<1x1x128xf32>
      %78 = vector.shape_cast %77 : vector<1x1x128xf32> to vector<1x128xf32>
      %79 = vector.shape_cast %76 : vector<1x128xf32> to vector<1x1x128xf32>
      tpu.vector_store %arg7[%c0_37, %c0_38, %c0_39], %79 {strides = array<i32>} : memref<1x1x128xf32, #tpu.memory_space<vmem>>, vector<1x1x128xf32>,
    } else {
    }
    %c0 = arith.constant 0 : index
    %c0_7 = arith.constant 0 : index
    %13 = vector.load %arg6[%c0, %c0_7] : memref<40x128xf32, #tpu.memory_space<vmem>>, vector<40x128xf32>
    %14 = arith.mulf %13, %13 : vector<40x128xf32>
    %cst = arith.constant dense<0.000000e+00> : vector<128xf32>
    %15 = vector.multi_reduction <add>, %14, %cst [0] : vector<40x128xf32> to vector<128xf32>
    %16 = vector.shape_cast %15 : vector<128xf32> to vector<1x128xf32>
    %c2_i32 = arith.constant 2 : i32
    %17 = arith.muli %arg0, %c2_i32 : i32
    %18 = arith.addi %17, %arg1 : i32
    %c128_i32 = arith.constant 128 : i32
    %19 = arith.muli %18, %c128_i32 : i32
    %20 = tpu.iota {dimensions = array<i32: 1>} : vector<1x128xi32>
    %21 = vector.broadcast %19 : i32 to vector<1x128xi32>
    %22 = arith.addi %21, %20 : vector<1x128xi32>
    %c0_8 = arith.constant 0 : index
    %c0_9 = arith.constant 0 : index
    %23 = vector.load %arg11[%c0_8, %c0_9] : memref<16x40xf32, #tpu.memory_space<vmem>>, vector<16x40xf32>
    %cst_10 = arith.constant dense<0.000000e+00> : vector<16x128xf32>
    %24 = tpu.matmul %23, %13, %cst_10 {dimension_numbers = #tpu.dot_dimension_numbers<[1], [0], [0], [1], [0, 0, 1, 1], [], []>, precision = #tpu.contract_precision<fp32>} : vector<16x40xf32>, vector<40x128xf32>, vector<16x128xf32> -> vector<16x128xf32>
    %c300_i32 = arith.constant 300 : i32
    %25 = vector.broadcast %c300_i32 : i32 to vector<1x128xi32>
    %26 = arith.cmpi slt, %22, %25 : vector<1x128xi32>
    %27 = arith.extui %26 : vector<1x128xi1> to vector<1x128xi32>
    %28 = arith.sitofp %27 : vector<1x128xi32> to vector<1x128xf32>
    %cst_11 = arith.constant 1.000000e+00 : f32
    %29 = vector.broadcast %cst_11 : f32 to vector<1x128xf32>
    %30 = arith.subf %29, %28 : vector<1x128xf32>
    %31 = arith.addf %16, %30 : vector<1x128xf32>
    %32 = math.rsqrt %31 : vector<1x128xf32>
    %33 = vector.broadcast %32 : vector<1x128xf32> to vector<16x128xf32>
    %34 = arith.mulf %24, %33 : vector<16x128xf32>
    %cst_12 = arith.constant -1.000000e+30 : f32
    %35 = vector.shape_cast %26 : vector<1x128xi1> to vector<1x128xi1>
    %36 = vector.broadcast %35 : vector<1x128xi1> to vector<16x128xi1>
    %37 = vector.broadcast %cst_12 : f32 to vector<16x128xf32>
    %38 = arith.select %36, %34, %37 : vector<16x128xi1>, vector<16x128xf32>
    %c0_13 = arith.constant 0 : index
    %c0_14 = arith.constant 0 : index
    %39 = vector.load %arg2[%c0_13, %c0_14] : memref<16x1xi32, #tpu.memory_space<vmem>>, vector<16x1xi32>
    %40 = vector.broadcast %22 : vector<1x128xi32> to vector<16x128xi32>
    %41 = vector.broadcast %39 : vector<16x1xi32> to vector<16x128xi32>
    %42 = arith.cmpi eq, %40, %41 : vector<16x128xi32>
    %43 = arith.extui %42 : vector<16x128xi1> to vector<16x128xi32>
    %44 = arith.sitofp %43 : vector<16x128xi32> to vector<16x128xf32>
    %c0_15 = arith.constant 0 : index
    %c0_16 = arith.constant 0 : index
    %c0_17 = arith.constant 0 : index
    %45 = vector.load %arg8[%c0_15, %c0_16, %c0_17] : memref<1x16x1xf32, #tpu.memory_space<vmem>>, vector<1x16x1xf32>
    %46 = vector.shape_cast %45 : vector<1x16x1xf32> to vector<16x1xf32>
    %cst_18 = arith.constant dense<0xFF800000> : vector<16xf32>
    %47 = vector.multi_reduction <maximumf>, %38, %cst_18 [1] : vector<16x128xf32> to vector<16xf32>
    %48 = vector.shape_cast %47 : vector<16xf32> to vector<16x1xf32>
    %49 = arith.maximumf %46, %48 : vector<16x1xf32>
    %c0_19 = arith.constant 0 : index
    %c0_20 = arith.constant 0 : index
    %c0_21 = arith.constant 0 : index
    %50 = vector.load %arg9[%c0_19, %c0_20, %c0_21] : memref<1x16x1xf32, #tpu.memory_space<vmem>>, vector<1x16x1xf32>
    %51 = vector.shape_cast %50 : vector<1x16x1xf32> to vector<16x1xf32>
    %52 = arith.subf %46, %49 : vector<16x1xf32>
    %53 = math.exp %52 : vector<16x1xf32>
    %54 = arith.mulf %51, %53 : vector<16x1xf32>
    %55 = vector.broadcast %49 : vector<16x1xf32> to vector<16x128xf32>
    %56 = arith.subf %38, %55 : vector<16x128xf32>
    %57 = math.exp %56 : vector<16x128xf32>
    %cst_22 = arith.constant dense<0.000000e+00> : vector<16xf32>
    %58 = vector.multi_reduction <add>, %57, %cst_22 [1] : vector<16x128xf32> to vector<16xf32>
    %59 = vector.shape_cast %58 : vector<16xf32> to vector<16x1xf32>
    %60 = arith.addf %54, %59 : vector<16x1xf32>
    %c0_23 = arith.constant 0 : index
    %c0_24 = arith.constant 0 : index
    %c0_25 = arith.constant 0 : index
    %61 = vector.load %arg9[%c0_23, %c0_24, %c0_25] : memref<1x16x1xf32, #tpu.memory_space<vmem>>, vector<1x16x1xf32>
    %62 = vector.shape_cast %61 : vector<1x16x1xf32> to vector<16x1xf32>
    %63 = vector.shape_cast %60 : vector<16x1xf32> to vector<1x16x1xf32>
    tpu.vector_store %arg9[%c0_23, %c0_24, %c0_25], %63 {strides = array<i32>} : memref<1x16x1xf32, #tpu.memory_space<vmem>>, vector<1x16x1xf32>,
    %c0_26 = arith.constant 0 : index
    %c0_27 = arith.constant 0 : index
    %c0_28 = arith.constant 0 : index
    %64 = vector.load %arg10[%c0_26, %c0_27, %c0_28] : memref<1x16x1xf32, #tpu.memory_space<vmem>>, vector<1x16x1xf32>
    %65 = vector.shape_cast %64 : vector<1x16x1xf32> to vector<16x1xf32>
    %66 = arith.mulf %44, %38 : vector<16x128xf32>
    %cst_29 = arith.constant dense<0.000000e+00> : vector<16xf32>
    %67 = vector.multi_reduction <add>, %66, %cst_29 [1] : vector<16x128xf32> to vector<16xf32>
    %68 = vector.shape_cast %67 : vector<16xf32> to vector<16x1xf32>
    %69 = arith.addf %65, %68 : vector<16x1xf32>
    %c0_30 = arith.constant 0 : index
    %c0_31 = arith.constant 0 : index
    %c0_32 = arith.constant 0 : index
    %70 = vector.load %arg10[%c0_30, %c0_31, %c0_32] : memref<1x16x1xf32, #tpu.memory_space<vmem>>, vector<1x16x1xf32>
    %71 = vector.shape_cast %70 : vector<1x16x1xf32> to vector<16x1xf32>
    %72 = vector.shape_cast %69 : vector<16x1xf32> to vector<1x16x1xf32>
    tpu.vector_store %arg10[%c0_30, %c0_31, %c0_32], %72 {strides = array<i32>} : memref<1x16x1xf32, #tpu.memory_space<vmem>>, vector<1x16x1xf32>,
    %c0_33 = arith.constant 0 : index
    %c0_34 = arith.constant 0 : index
    %c0_35 = arith.constant 0 : index
    %73 = vector.load %arg8[%c0_33, %c0_34, %c0_35] : memref<1x16x1xf32, #tpu.memory_space<vmem>>, vector<1x16x1xf32>
    %74 = vector.shape_cast %73 : vector<1x16x1xf32> to vector<16x1xf32>
    %75 = vector.shape_cast %49 : vector<16x1xf32> to vector<1x16x1xf32>
    tpu.vector_store %arg8[%c0_33, %c0_34, %c0_35], %75 {strides = array<i32>} : memref<1x16x1xf32, #tpu.memory_space<vmem>>, vector<1x16x1xf32>,
    return
  }
  func.func @transform_0(%arg0: i32, %arg1: i32) -> (i32, i32) {
    %c0_i32 = arith.constant 0 : i32
    %c0_i32_0 = arith.constant 0 : i32
    %c0_i32_1 = arith.constant 0 : i32
    return %c0_i32, %c0_i32_0 : i32, i32
  }
  func.func @transform_1(%arg0: i32, %arg1: i32) -> (i32, i32) {
    %c0_i32 = arith.constant 0 : i32
    %c0_i32_0 = arith.constant 0 : i32
    %c0_i32_1 = arith.constant 0 : i32
    return %c0_i32, %c0_i32_0 : i32, i32
  }
  func.func @transform_2(%arg0: i32, %arg1: i32) -> (i32, i32) {
    %c0_i32 = arith.constant 0 : i32
    %c0_i32_0 = arith.constant 0 : i32
    %c0_i32_1 = arith.constant 0 : i32
    return %c0_i32, %c0_i32_0 : i32, i32
  }
  func.func @transform_3(%arg0: i32, %arg1: i32) -> (i32, i32) {
    %c0_i32 = arith.constant 0 : i32
    %c0_i32_0 = arith.constant 0 : i32
    %c0_i32_1 = arith.constant 0 : i32
    return %c0_i32, %c0_i32_0 : i32, i32
  }
  func.func @transform_4(%arg0: i32, %arg1: i32) -> (i32, i32) {
    %c2_i32 = arith.constant 2 : i32
    %0 = arith.muli %arg0, %c2_i32 : i32
    %1 = arith.addi %0, %arg1 : i32
    %c2_i32_0 = arith.constant 2 : i32
    %2 = arith.minsi %1, %c2_i32_0 : i32
    %c0_i32 = arith.constant 0 : i32
    %c0_i32_1 = arith.constant 0 : i32
    return %c0_i32, %2 : i32, i32
  }
  func.func @transform_5(%arg0: i32, %arg1: i32) -> (i32, i32, i32) {
    %c0_i32 = arith.constant 0 : i32
    %c0_i32_0 = arith.constant 0 : i32
    %c0_i32_1 = arith.constant 0 : i32
    return %arg0, %c0_i32, %c0_i32_0 : i32, i32, i32
  }
  func.func @transform_6(%arg0: i32, %arg1: i32) -> (i32, i32, i32) {
    %c0_i32 = arith.constant 0 : i32
    %c0_i32_0 = arith.constant 0 : i32
    %c0_i32_1 = arith.constant 0 : i32
    return %arg0, %c0_i32, %c0_i32_0 : i32, i32, i32
  }
  func.func @transform_7(%arg0: i32, %arg1: i32) -> (i32, i32, i32) {
    %c0_i32 = arith.constant 0 : i32
    %c0_i32_0 = arith.constant 0 : i32
    %c0_i32_1 = arith.constant 0 : i32
    return %arg0, %c0_i32, %c0_i32_0 : i32, i32, i32
  }
  func.func @transform_8(%arg0: i32, %arg1: i32) -> (i32, i32, i32) {
    %c0_i32 = arith.constant 0 : i32
    %c0_i32_0 = arith.constant 0 : i32
    %c0_i32_1 = arith.constant 0 : i32
    return %arg0, %c0_i32, %c0_i32_0 : i32, i32, i32
  }
}

</mosaic_0001>

<bundles_post_ra>
// kernel: tpu_custom_call.1
= control target key start
LH: loop header
LB: loop body
LE: loop exit
PB: predicated region body
PF: predicated region fallthrough
CT: control target
= control target key end

     0   :  { %s3453_s0 = inlined_call_operand.vmem [shape: s32[16,1], index: 0, kind: input, shape index: {}]   ;;  %s3454_s1 = inlined_call_operand.vmem [shape: s32[1,8], index: 1, kind: input, shape index: {}]   ;;  %s3455_s2 = inlined_call_operand.vmem [shape: f32[8,40], index: 2, kind: input, shape index: {}]   ;;  %s3456_s3 = inlined_call_operand.vmem [shape: f32[8,40], index: 3, kind: input, shape index: {}]   ;;  %s3457_s4 = inlined_call_operand.hbm [shape: f32[40,300], index: 4, kind: input, shape index: {}]   ;;  %s3458_s5 = inlined_call_operand.hbm [shape: f32[2,1,128], index: 5, kind: output, shape index: {0}]   ;;  %s3459_s6 = inlined_call_operand.vmem [shape: f32[2,16,1], index: 6, kind: output, shape index: {1}]   ;;  %s3460_s7 = inlined_call_operand.vmem [shape: f32[2,16,1], index: 7, kind: output, shape index: {2}]   ;;  %s3461_s8 = inlined_call_operand.vmem [shape: f32[2,16,1], index: 8, kind: output, shape index: {3}]  }
   0x1   :  { %3468 = sst [smem:[#allocation16_spill]] %s3457_s4 }
   0x2   :  { %14 = vsyncpa [#allocation4], 0 }
   0x3   :  { %16 = vsyncpa [#allocation4 + $0x1], 0 }
   0x4   :  { %17 = vsyncpa [#allocation5], 0 }
   0x5   :  { %19 = vsyncpa [#allocation5 + $0x1], 0  ;;  %s2964_s27 = smov 0   ;;  %s2966_s28 = smov 0  }
   0x6   :  { %s2968_s29 = smov 0   ;;  %s2970_s30 = smov 0  }
   0x7   :  { %s2972_s9 = smov 0   ;;  %s2974_s10 = smov 0  }
   0x8   :  { %s2976_s11 = smov 0   ;;  %s2978_s12 = smov 0  }
   0x9   :  { %s2980_s13 = smov 0   ;;  %s2982_s14 = smov 0  }
   0xa   :  { %s2984_s15 = smov 0  }
   0xb LB: > { %3469 = sst [smem:[#allocation9_spill]] %s2884_s10  ;;  %s2285_s16 = sadd.s32 4294967295, %s2904_s15   ;;  %s2904_s15 = sphi %s2984_s15, %s25_s15   ;;  %s2900_s14 = sphi %s2982_s14, %s3494_s14   ;;  %s2896_s13 = sphi %s2980_s13, %s3493_s13   ;;  %s2892_s12 = sphi %s2978_s12, %s3492_s12   ;;  %s2888_s11 = sphi %s2976_s11, %s3491_s11   ;;  %s2884_s10 = sphi %s2974_s10, %s3490_s10   ;;  %s2880_s9 = sphi %s2972_s9, %s3499_s9   ;;  %s2876_s30 = sphi %s2970_s30, %s3498_s30   ;;  %s2872_s29 = sphi %s2968_s29, %s3497_s29   ;;  %s2868_s28 = sphi %s2966_s28, %s3496_s28   ;;  %s2864_s27 = sphi %s2964_s27, %s3495_s27  }
   0xc   : > { %3470 = sst [smem:[#allocation10_spill]] %s2896_s13  ;;  %s34_s18 = sadd.s32 1, %s2896_s13 }
   0xd   : > { %3471 = sst [smem:[#allocation11_spill]] %s2900_s14  ;;  %s37_s19 = sadd.s32 1, %s2900_s14 }
   0xe   : > { %p35_p0 = scmp.ge.s32.totalorder %s34_s18, 2  ;;  %s2287_s20 = sshll.u32 %s2900_s14, 1 }
   0xf   : > { %s126_s21 = sadd.s32 %s2896_s13, %s2287_s20  ;;  %s136_s22 = sadd.s32 1, %s2884_s10 }
  0x10   : > { %s3501_s18 = smov (%p35_p0, %s34_s18), 0  ;;  %s3503_s19 = smov (!%p35_p0, %s37_s19), %s2900_s14 }
  0x11   : > { %3472 = sst [smem:[#allocation12_spill]] %s3501_s18  ;;  %p127_p1 = scmp.lt.s32.totalorder %s126_s21, 2 }
  0x12   : > { %p143_p2 = scmp.ne.s32.totalorder %s2884_s10, %s2880_s9  ;;  %p39_p3 = scmp.ge.s32.totalorder %s3503_s19, 2 }
  0x13   : > { %p144_p4 = scmp.eq.s32.totalorder %s2904_s15, 0  ;;  %s3505_s21 = smov (!%p127_p1, %s126_s21), 2 }
  0x14   : > { %s3507_s19 = smov (%p39_p3, %s3503_s19), 0  ;;  %p149_p6 = scmp.ne.s32.totalorder %s2880_s9, %s2876_s30 }
  0x15   : > { %3473 = sst [smem:[#allocation13_spill]] %s3507_s19  ;;  %p3034_p5 = por %p144_p4, %p143_p2 }
  0x16   : > { %s2288_s24 = sshll.u32 %s3507_s19, 1  ;;  %p150_p7 = scmp.eq.s32.totalorder %s2285_s16, 0 }
  0x17   : > { %s130_s25 = sadd.s32 %s2288_s24, %s3501_s18  ;;  %s159_s26 = ssub.s32 %s2900_s14, %s3507_s19 }
  0x18   : > { %p131_p8 = scmp.lt.s32.totalorder %s130_s25, 2  ;;  %p3046_p9 = por %p150_p7, %p149_p6 }
  0x19   : > { %p160_p10 = scmp.eq.s32.totalorder %s159_s26, 0  ;;  %s162_s17 = sadd.s32 1, %s2872_s29 }
  0x1a   : > { %s3509_s25 = smov (!%p131_p8, %s130_s25), 2  ;;  %p172_p11 = scmp.ne.s32.totalorder %s2872_s29, %s2868_s28 }
  0x1b   : > { %s3052_s13 = scalar_select %p160_p10, %s2872_s29, %s162_s17  }
  0x1c   : > { %s133_s30 = ssub.s32 %s3505_s21, %s3509_s25  ;;  %p173_p13 = scmp.eq.s32.totalorder %s2285_s16, 3 }
  0x1d   : > { %3476 = sst [smem:[#allocation14_spill]] %s3052_s13  ;;  %p134_p12 = scmp.eq.s32.totalorder %s133_s30, 0 }
  0x1e   : > { %p178_p0 = scmp.ne.s32.totalorder %s2868_s28, %s2864_s27  ;;  %s3477_s24 = sadd.s32 4294967294, %s2904_s15  }
  0x1f   : > { %p179_p1 = scmp.eq.s32.totalorder %s3477_s24, 3  ;;  %p3065_p2 = por %p173_p13, %p172_p11 }
  0x20   : > { %s3063_s19 = scalar_select %p134_p12, %s2884_s10, %s136_s22  }
  0x21   : > { %s3479_s18 = scalar_select %p3065_p2, 1, 0 }
  0x22   : > { %3478 = sst [smem:[#allocation15_spill]] %s3063_s19  ;;  %p3069_p3 = por %p179_p1, %p178_p0 }
  0x23   : > { %p2614_p4 = scmp.lt.s32.totalorder %s2904_s15, 4  ;;  %s289_s17 = sand.u32 1, %s2884_s10  }
  0x24   : > { %s3480_s26 = scalar_select %p3069_p3, 1, 0 }
  0x25   : > { %s2292_s25 = sshll.u32 %s3505_s21, 7  ;;  %s2596_s30 = smul.u32 40, %s289_s17 }
  0x26   : > { %s3481_s4 = sld [smem:[#allocation16_spill]]  ;;  %p3082_p6 = pnand %p2614_p4, %p3034_p5 }
  0x27   : > { %s293_s24 = scalar_lea.vmem [#allocation3], %s2596_s30  ;;  %s3089_s21 = scalar_lea.sflag [#allocation4], %s289_s17 }
  0x28   : > { %s303_s19 = sshll.u32 %s293_s24, 4  ;;  %p2754_p10 = pneg %p3082_p6  ;;  %s3086_s19 = int_to_ptr.vmem [resolvable:$true] %s303_s19 }
  0x2c   : > { %s3078_s16 = scalar_lea.hbm %s3481_s4, %s2292_s25  ;;  %s2757_s25 = scalar_lea.hbm %s3481_s4, 1920 }
  0x2d   : > { %s2752_s13 = scalar_lea.hbm %s3078_s16, 640  ;;  %p2758_p12 = scmp.lt.u32.totalorder %s3078_s16, %s3481_s4 }
  0x2e   : > { %p2753_p8 = scmp.ne.s32.totalorder %s3078_s16, %s2752_s13  ;;  %p2759_p13 = scmp.lt.u32.totalorder %s2757_s25, %s2752_s13 }
  0x2f   : > { %p2761_p1 = scmp.lt.u32.totalorder %s2752_s13, %s3078_s16 }
  0x30   : > { %p2755_p11 = pnand %p2754_p10, %p2753_p8  ;;  %p2760_p0 = por %p2759_p13, %p2758_p12 }
  0x32   : > { %p2756_p5 = pneg %p2755_p11  ;;  %p2762_p4 = por %p2761_p1, %p2760_p0 }
  0x34   : > { %p2763_p7 = pnand %p2762_p4, %p2756_p5 }
  0x36   : > { %2766 = shalt.err (!%p2763_p7)
}
  0x37   : > { %s2767_s17 = scalar_lea.vmem %s3086_s19, 640  ;;  %s2906_s24 = smov [#allocation3]  }
  0x38   : > { %p2768_p8 = scmp.ne.s32.totalorder %s3086_s19, %s2767_s17  ;;  %s2772_s14 = sshll.u32 %s2906_s24, 4  ;;  %s2773_s14 = int_to_ptr.vmem [resolvable:$false] %s2772_s14 }
  0x39   : > { %s2774_s10 = scalar_lea.vmem %s2773_s14, 1280  ;;  %p2775_p2 = scmp.lt.s32.totalorder %s3086_s19, %s2773_s14 }
  0x3a   : > { %p2770_p11 = pnand %p2768_p8, %p2754_p10  ;;  %p2776_p12 = scmp.lt.s32.totalorder %s2774_s10, %s2767_s17 }
  0x3c   : > { %p2771_p3 = pneg %p2770_p11  ;;  %p2777_p13 = por %p2776_p12, %p2775_p2 }
  0x3e   : > { %p2778_p0 = pnand %p2777_p13, %p2771_p3 }
  0x40   : > { %2781 = shalt.err (!%p2778_p0)
}
  0x41   : > { %s2907_s13 = smov 384   ;;  %s2908_s23 = smov 128  }
  0x42   : > { %s2909_s25 = smov 8   ;;  %p311_p7 = scmp.lt.s32.totalorder %s2904_s15, 5 }
  0x43   : > { %2609 = dma.hbm_to_vmem [thread:$0]  (!%p3082_p6), %s3078_s16, 640, %s3086_s19, %s3089_s21, %s2907_s13, %s2908_s23, %s2909_s25  }
  0x44   : > { %p3483_p10 = scmp.ge.s32.totalorder %s2904_s15, 1 }
  0x46   : > { %p312_p5 = pnand %p3483_p10, %p311_p7 }
  0x47   : > { %s317_s30 = sand.u32 (!%p312_p5), 1, %s2880_s9  }
  0x48   : > { %315 = sbr.rel (%p312_p5) target bundleno = 2060 (0x80c), region = 40  ;;  %s318_s24 = scalar_lea.sflag (!%p312_p5), [#allocation4], %s317_s30 }
  0x49   : > { %s2597_s17 = smul.u32 (!%p312_p5), 40, %s317_s30 }
  0x4b   : > { %s3121_s14 = scalar_lea.vmem (!%p312_p5), [#allocation3], %s2597_s17 }
  0x4f   : > { %2855 = dma.done.wait (%p3046_p9), %s318_s24, 640  }
  0x50   : > { %2857 = vsyncadd (%p3046_p9), %s318_s24, 4294966656  ;;  %s345_s19 = sand.u32 1, %s2868_s28   ;;  %p372_p2 = scmp.lt.s32.totalorder %s2892_s12, 1 }
  0x51   : > { %p387_p3 = scmp.eq.s32.totalorder %s2888_s11, 0  ;;  %s3148_s4 = scalar_lea.vmem [#allocation6], %s345_s19 }
  0x52   : > { %s373_s16 = scalar_select %p372_p2, %s2892_s12, 1 }
  0x53   : > { %p2300_p9 = scmp.ne.s32.totalorder %s2888_s11, 0 }
  0x54   : > { %s2311_s22 = sshll.u32 %s373_s16, 4  ;;  %v391_v0 = vld [vmem:[%s3455_s2] sm:$0xff] (!%p2300_p9)  ;;  %vm394_vm0 = vcmask (!%p2300_p9), 326656   ;;  %vm418_vm1 = vcmask (!%p2300_p9), 7168   ;;  %v2910_v16 = vmov (!%p2300_p9), -1e+30  }
  0x55   : > { %s3134_s13 = scalar_lea.vmem %s3459_s6, %s2311_s22  ;;  %s3139_s20 = scalar_lea.vmem %s3460_s7, %s2311_s22  ;;  %v392_v1 = vld [vmem:[%s3456_s3] sm:$0xff] (!%p2300_p9)  ;;  %v393_v2 = vmul.f32 (!%p2300_p9), %v391_v0, %v391_v0  ;;  %v2911_v17 = vmov (!%p2300_p9), 0.0  }
  0x56   : > { %s3144_s24 = scalar_lea.vmem %s3461_s8, %s2311_s22  ;;  %390 = sbr.rel (%p2300_p9) target bundleno = 395 (0x18b), region = 48  ;;  %v400_v3 = vmul.f32 (!%p2300_p9), %v392_v1, %v392_v1  ;;  %419 = vst.msk [vmem:[%s3134_s13] sm:$0xff] (!%p2300_p9), %vm418_vm1, %v2910_v16  ;;  %420 = vst.msk [vmem:[%s3134_s13 + $0x8] sm:$0xff] (!%p2300_p9), %vm418_vm1, %v2910_v16 }
  0x57   : > { %v395_v4 = vsel (!%p2300_p9), %vm394_vm0, %v393_v2, 0.0  ;;  %421 = vst.msk [vmem:[%s3139_s20] sm:$0xff] (!%p2300_p9), %vm418_vm1, %v2911_v17  ;;  %422 = vst.msk [vmem:[%s3139_s20 + $0x8] sm:$0xff] (!%p2300_p9), %vm418_vm1, %v2911_v17 }
  0x58   : > { %396 = vadd.xlane.f32.xlu0 (!%p2300_p9), %v395_v4  ;;  %v401_v5 = vsel (!%p2300_p9), %vm394_vm0, %v400_v3, 0.0  ;;  %423 = vst.msk [vmem:[%s3144_s24] sm:$0xff] (!%p2300_p9), %vm418_vm1, %v2911_v17  ;;  %424 = vst.msk [vmem:[%s3144_s24 + $0x8] sm:$0xff] (!%p2300_p9), %vm418_vm1, %v2911_v17 }
  0x5c   : > { %402 = vadd.xlane.f32.xlu0 (!%p2300_p9), %v401_v5 }
  0xe5   : > { %v397_v6 = vpop.xlane.xlu0 %396 }
  0xe6   : > { %2715 = vrsqrt.f32 %v397_v6 }
  0xe9   : > { %v403_v7 = vpop.xlane.xlu0 %402 }
  0xea   : > { %2717 = vrsqrt.f32 %v403_v7 }
  0xf0   : > { %v2716_v8 = vpop.eup %2715 }
  0xf1   : > { %v399_v9 = vmul.f32 %v2716_v8, %v391_v0 }
  0xf3   : > { %v406_v10 = vmul.f32 %v399_v9, %v392_v1 }
  0xf4   : > { %v2718_v11 = vpop.eup %2717 }
  0xf5   : > { %v407_v12 = vsel %vm394_vm0, %v406_v10, 0.0  ;;  %v405_v13 = vmul.f32 %v2718_v11, %v392_v1 }
  0xf6   : > { %408 = vadd.xlane.f32.xlu1 %v407_v12 }
  0xf7   : > { %v410_v14 = vmul.f32 %v405_v13, %v391_v0 }
  0xf9   : > { %v411_v15 = vsel %vm394_vm0, %v410_v14, 0.0 }
  0xfa   : > { %412 = vadd.xlane.f32.xlu1 %v411_v15 }
 0x183   : > { %v409_v18 = vpop.xlane.xlu1 %408 }
 0x184   : > { %v414_v19 = vmul.f32 %v409_v18, %v399_v9 }
 0x186   : > { %415 = vst.msk [vmem:[#allocation2] sm:$0xff] %vm394_vm0, %v414_v19 }
 0x187   : > { %v413_v20 = vpop.xlane.xlu1 %412 }
 0x188   : > { %v416_v21 = vmul.f32 %v413_v20, %v405_v13 }
 0x18a   : > { %417 = vst.msk [vmem:[#allocation2 + $0x8] sm:$0xff] %vm394_vm0, %v416_v21 }
 0x18b PF: > { %p425_p6 = scmp.eq.s32.totalorder %s2892_s12, 0 }
 0x18d   : > { %p426_p1 = pnand %p425_p6, %p387_p3 }
 0x18e   : > { %v430_v22 = vld [vmem:[%s3455_s2] sm:$0xff] (!%p426_p1)  ;;  %vm433_vm2 = vcmask (!%p426_p1), 326656   ;;  %v2912_v28 = vmov (!%p426_p1), 0.0   ;;  %vm2913_vm3 = vmmov (!%p426_p1), 0   ;;  %v2914_v60 = vmov (!%p426_p1), 0  }
 0x18f   : > { %429 = sbr.rel (%p426_p1) target bundleno = 1350 (0x546), region = 52  ;;  %v431_v23 = vld [vmem:[%s3456_s3] sm:$0xff] (!%p426_p1)  ;;  %v432_v24 = vmul.f32 (!%p426_p1), %v430_v22, %v430_v22  ;;  %2380 = vmatprep.subr.mxu0 (!%p426_p1), %v2912_v28  ;;  %2410 = vmatprep.subr.mxu1 (!%p426_p1), %v2912_v28  ;;  %v924_v32 = vsel (!%p426_p1), %vm433_vm2, %v430_v22, 0  ;;  %vm458_vm4 = vcmask (!%p426_p1), 64512  }
 0x190   : > { %v439_v25 = vmul.f32 (!%p426_p1), %v431_v23, %v431_v23  ;;  %2382 = vmatprep.mubr.msk.f32.mxu0 (!%p426_p1), %vm2913_vm3, %v2912_v28  ;;  %2412 = vmatprep.mubr.msk.f32.mxu1 (!%p426_p1), %vm2913_vm3, %v2912_v28  ;;  %v472_v29 = vsel (!%p426_p1), %vm433_vm2, %v431_v23, 0  ;;  %v3190_v33 = vand.u32 (!%p426_p1), 4294901760, %v924_v32  ;;  %v445_v59 = vld [vmem:[%s3453_s0] sm:$0xff] (!%p426_p1) }
 0x191   : > { %v434_v26 = vsel (!%p426_p1), %vm433_vm2, %v432_v24, 0.0  ;;  %v3187_v30 = vand.u32 (!%p426_p1), 4294901760, %v472_v29  ;;  %2719 = vset.pattern.permute.xlu0 (!%p426_p1), %v2914_v60  ;;  %v2301_v13 = vld [vmem:[%s3454_s1] ss:$0 sm:$0xff] (!%p426_p1) }
 0x192   : > { %435 = vadd.xlane.f32.xlu0 (!%p426_p1), %v434_v26  ;;  %v440_v27 = vsel (!%p426_p1), %vm433_vm2, %v439_v25, 0.0  ;;  %v996_v36 = vsub.f32 (!%p426_p1), %v924_v32, %v3190_v33 }
 0x193   : > { %v544_v34 = vsub.f32 (!%p426_p1), %v472_v29, %v3187_v30 }
 0x194   : > { %v997_v41 = vand.u32 (!%p426_p1), 4294901760, %v996_v36 }
 0x195   : > { %v545_v37 = vand.u32 (!%p426_p1), 4294901760, %v544_v34 }
 0x196   : > { %441 = vadd.xlane.f32.xlu0 %v440_v27  ;;  %v998_v47 = vsub.f32 %v996_v36, %v997_v41 }
 0x197   : > { %v546_v40 = vsub.f32 %v544_v34, %v545_v37 }
 0x198   : > { %v999_v52 = vand.u32 4294901760, %v998_v47 }
 0x199   : > { %v547_v45 = vand.u32 4294901760, %v546_v40 }
 0x1ac   : > { %448 = vperm.xlu0 %2719, %v445_v59  }
 0x21f   : > { %v436_v31 = vpop.xlane.xlu0 %435 }
 0x220   : > { %2720 = vrsqrt.f32 %v436_v31 }
 0x223   : > { %v442_v35 = vpop.xlane.xlu0 %441 }
 0x224   : > { %2722 = vrsqrt.f32 %v442_v35 }
 0x22a   : > { %v2721_v38 = vpop.eup %2720 }
 0x22b   : > { %v438_v39 = vmul.f32 %v2721_v38, %v430_v22  ;;  %v449_v14 = vpop.permute.xlu0 %448 }
 0x22c   : > { %v454_v15 = vsub.s32 %v449_v14, %v2301_v13 }
 0x22d   : > { %v475_v42 = vsel %vm433_vm2, %v438_v39, 0 }
 0x22e   : > { %v2723_v43 = vpop.eup %2722  ;;  %v478_v44 = vand.u32 4294901760, %v475_v42  ;;  %vm3242_vm5 = vcmp.eq.s32.totalorder %v454_v15, 0 }
 0x22f   : > { %v444_v46 = vmul.f32 %v2723_v43, %v431_v23  ;;  %v2302_v17 = vsel %vm3242_vm5, 1.0, %v2912_v28 }
 0x230   : > { %2381 = vmatpush3.xpose.msra.mxu0 %v478_v44  ;;  %v555_v48 = vsub.f32 %v475_v42, %v478_v44  ;;  %v459_v18 = vsel %vm458_vm4, %v2302_v17, 0.0 }
 0x231   : > { %v927_v49 = vsel %vm433_vm2, %v444_v46, 0  ;;  %2385 = vmatprep.subr.mxu0 %v2912_v28  ;;  %v460_v19 = vrot.slane %v459_v18, 4 }
 0x232   : > { %v930_v50 = vand.u32 4294901760, %v927_v49  ;;  %v556_v51 = vand.u32 4294901760, %v555_v48 }
 0x233   : > { %2383 = vmatmul.mubr.f32.vlgmr.msra.gmra.mrb[0].mxu0 %v547_v45  ;;  %v461_v20 = vadd.f32 %v460_v19, %v459_v18 }
 0x234   : > { %2411 = vmatpush3.xpose.msra.mxu1 %v930_v50  ;;  %v1007_v53 = vsub.f32 %v927_v49, %v930_v50  ;;  %v557_v54 = vsub.f32 %v555_v48, %v556_v51  ;;  %2387 = vmatprep.mubr.msk.f32.mxu0 %vm2913_vm3, %v2912_v28 }
 0x235   : > { %2415 = vmatprep.subr.mxu1 %v2912_v28  ;;  %v462_v21 = vrot.slane %v461_v20, 2 }
 0x236   : > { %v558_v55 = vand.u32 4294901760, %v557_v54  ;;  %v1008_v56 = vand.u32 4294901760, %v1007_v53 }
 0x237   : > { %2413 = vmatmul.mubr.f32.vlgmr.msra.gmra.mrb[0].mxu1 %v999_v52  ;;  %v463_v22 = vadd.f32 %v462_v21, %v461_v20 }
 0x238   : > { %2386 = vmatpush3.xpose.msra.mxu0 %v558_v55  ;;  %v1009_v57 = vsub.f32 %v1007_v53, %v1008_v56  ;;  %2417 = vmatprep.mubr.msk.f32.mxu1 %vm2913_vm3, %v2912_v28 }
 0x239   : > { %2390 = vmatprep.subr.mxu0 %v2912_v28  ;;  %v464_v23 = vrot.slane %v463_v22, 1 }
 0x23a   : > { %v1010_v58 = vand.u32 4294901760, %v1009_v57 }
 0x23b   : > { %2388 = vmatmul.mubr.f32.vlgmr.msra.gmra.mrb[0].mxu0 %v3187_v30  ;;  %v465_v24 = vadd.f32 %v464_v23, %v463_v22 }
 0x23c   : > { %2391 = vmatpush3.xpose.msra.mxu0 %v555_v48  ;;  %2416 = vmatpush3.xpose.msra.mxu1 %v1010_v58 }
 0x23d   : > { %2420 = vmatprep.subr.mxu1 %v2912_v28  ;;  %2392 = vmatprep.mubr.msk.f32.mxu0 %vm2913_vm3, %v2912_v28 }
 0x23e   : > { %2395 = vmatprep.subr.mxu0 %v2912_v28 }
 0x23f   : > { %2418 = vmatmul.mubr.f32.vlgmr.msra.gmra.mrb[0].mxu1 %v3190_v33 }
 0x240   : > { %2421 = vmatpush3.xpose.msra.mxu1 %v1007_v53  ;;  %2422 = vmatprep.mubr.msk.f32.mxu1 %vm2913_vm3, %v2912_v28 }
 0x241   : > { %2425 = vmatprep.subr.mxu1 %v2912_v28 }
 0x243   : > { %2393 = vmatmul.mubr.f32.vlgmr.msra.gmra.mrb[0].mxu0 %v544_v34 }
 0x244   : > { %2396 = vmatpush3.xpose.msra.mxu0 %v478_v44  ;;  %2397 = vmatprep.mubr.msk.f32.mxu0 %vm2913_vm3, %v2912_v28 }
 0x245   : > { %2400 = vmatprep.subr.mxu0 %v2912_v28 }
 0x247   : > { %2423 = vmatmul.mubr.f32.vlgmr.msra.gmra.mrb[0].mxu1 %v996_v36 }
 0x248   : > { %2426 = vmatpush3.xpose.msra.mxu1 %v930_v50  ;;  %2427 = vmatprep.mubr.msk.f32.mxu1 %vm2913_vm3, %v2912_v28 }
 0x249   : > { %2430 = vmatprep.subr.mxu1 %v2912_v28 }
 0x24b   : > { %2398 = vmatmul.mubr.f32.vlgmr.msra.gmra.mrb[0].mxu0 %v545_v37 }
 0x24c   : > { %2401 = vmatpush3.xpose.msra.mxu0 %v556_v51  ;;  %2402 = vmatprep.mubr.msk.f32.mxu0 %vm2913_vm3, %v2912_v28 }
 0x24d   : > { %2405 = vmatprep.subr.mxu0 %v2912_v28 }
 0x24f   : > { %2428 = vmatmul.mubr.f32.vlgmr.msra.gmra.mrb[0].mxu1 %v997_v41 }
 0x250   : > { %2431 = vmatpush3.xpose.msra.mxu1 %v1008_v56  ;;  %2432 = vmatprep.mubr.msk.f32.mxu1 %vm2913_vm3, %v2912_v28 }
 0x251   : > { %2435 = vmatprep.subr.mxu1 %v2912_v28 }
 0x253   : > { %2403 = vmatmul.mubr.f32.vlgmr.msra.gmra.mrb[0].mxu0 %v3187_v30 }
 0x254   : > { %2406 = vmatpush3.xpose.msra.mxu0 %v478_v44  ;;  %2407 = vmatprep.mubr.msk.f32.mxu0 %vm2913_vm3, %v2912_v28 }
 0x257   : > { %2433 = vmatmul.mubr.f32.vlgmr.msra.gmra.mrb[0].mxu1 %v3190_v33 }
 0x258   : > { %2436 = vmatpush3.xpose.msra.mxu1 %v930_v50  ;;  %2437 = vmatprep.mubr.msk.f32.mxu1 %vm2913_vm3, %v2912_v28 }
 0x25b   : > { %2408 = vmatmul.mubr.f32.vlgmr.msra.gmra.mrb[0].mxu0 %v3187_v30 }
 0x25f   : > { %2438 = vmatmul.mubr.f32.vlgmr.msra.gmra.mrb[0].mxu1 %v3190_v33 }
 0x32e   : > { %v919_v61 = vpop.f32.mrb[0].mxu0 }
 0x32f   : > { %v2409_v62 = vpop.f32.mrb[1].mxu0  ;;  %v1375_v63 = vsel %vm458_vm4, %v919_v61, -inf }
 0x330   : > { %1376 = vmax.xlane.f32.xlu1 %v1375_v63 }
 0x332   : > { %v1371_v0 = vpop.f32.mrb[0].mxu1 }
 0x333   : > { %v2439_v1 = vpop.f32.mrb[1].mxu1  ;;  %v1401_v2 = vsel %vm458_vm4, %v1371_v0, -inf }
 0x334   : > { %1402 = vmax.xlane.f32.xlu1 %v1401_v2 }
 0x3bd   : > { %v1377_v3 = vpop.xlane.xlu1 %1376 }
 0x3be   : > { %v1378_v4 = vsub.f32 %v919_v61, %v1377_v3 }
 0x3c0   : > { %v1379_v5 = vmul.f32 1.442695, %v1378_v4 }
 0x3c1   : > { %v1403_v6 = vpop.xlane.xlu1 %1402 }
 0x3c2   : > { %2724 = vpow2.f32 %v1379_v5  ;;  %v1404_v7 = vsub.f32 %v1371_v0, %v1403_v6 }
 0x3c4   : > { %v1405_v8 = vmul.f32 1.442695, %v1404_v7 }
 0x3c6   : > { %2726 = vpow2.f32 %v1405_v8 }
 0x3c7   : > { %2728 = vrsqrt.f32 %v465_v24 }
 0x3cc   : > { %v2725_v9 = vpop.eup %2724 }
 0x3cd   : > { %v1381_v10 = vsel %vm458_vm4, %v2725_v9, 0.0 }
 0x3ce   : > { %1382 = vadd.xlane.f32.xlu1 %v1381_v10 }
 0x3d0   : > { %v2727_v11 = vpop.eup %2726 }
 0x3d1   : > { %v1407_v12 = vsel %vm458_vm4, %v2727_v11, 0.0  ;;  %v2729_v25 = vpop.eup %2728 }
 0x3d2   : > { %1408 = vadd.xlane.f32.xlu1 %v1407_v12  ;;  %v467_v26 = vadd.f32 1e-08, %v2729_v25 }
 0x3d4   : > { %2730 = vlog2.f32 %v467_v26 }
 0x3de   : > { %v2731_v30 = vpop.eup %2730 }
 0x3df   : > { %v469_v31 = vmul.f32 0.6931472, %v2731_v30 }
 0x3e1   : > { %v470_v36 = vsel %vm3242_vm5, %v469_v31, -18.420681 }
 0x45b   : > { %v1383_v27 = vpop.xlane.xlu1 %1382 }
 0x45c   : > { %2732 = vlog2.f32 %v1383_v27 }
 0x45d   : > { %2734 = vrcp.f32 %v1383_v27 }
 0x45f   : > { %v1409_v29 = vpop.xlane.xlu1 %1408 }
 0x460   : > { %2736 = vlog2.f32 %v1409_v29 }
 0x461   : > { %2738 = vrcp.f32 %v1409_v29 }
 0x466   : > { %v2733_v28 = vpop.eup %2732 }
 0x467   : > { %v1387_v32 = vmul.f32 0.6931472, %v2733_v28  ;;  %v2735_v33 = vpop.eup %2734 }
 0x468   : > { %v1385_v38 = vmul.f32 %v2735_v33, %v2725_v9 }
 0x469   : > { %v1388_v34 = vsub.f32 %v1378_v4, %v1387_v32 }
 0x46a   : > { %v2737_v35 = vpop.eup %2736 }
 0x46b   : > { %v1413_v37 = vmul.f32 0.6931472, %v2737_v35  ;;  %v1389_v39 = vsub.f32 %v1388_v34, %v470_v36  ;;  %v2739_v40 = vpop.eup %2738 }
 0x46c   : > { %v1411_v44 = vmul.f32 %v2739_v40, %v2727_v11 }
 0x46d   : > { %v1390_v41 = vmul.f32 %v1389_v39, %v1385_v38  ;;  %v1414_v42 = vsub.f32 %v1404_v7, %v1413_v37 }
 0x46f   : > { %v1391_v43 = vsel %vm458_vm4, %v1390_v41, 0.0  ;;  %v1415_v45 = vsub.f32 %v1414_v42, %v470_v36 }
 0x470   : > { %1392 = vadd.xlane.f32.xlu1 %v1391_v43 }
 0x471   : > { %v1416_v46 = vmul.f32 %v1415_v45, %v1411_v44 }
 0x473   : > { %v1417_v47 = vsel %vm458_vm4, %v1416_v46, 0.0 }
 0x474   : > { %1418 = vadd.xlane.f32.xlu1 %v1417_v47 }
 0x4fd   : > { %v1393_v48 = vpop.xlane.xlu1 %1392 }
 0x4fe   : > { %v1394_v49 = vrot.slane %v1393_v48, 4 }
 0x500   : > { %v1395_v50 = vadd.f32 %v1394_v49, %v1393_v48 }
 0x501   : > { %v1419_v51 = vpop.xlane.xlu1 %1418 }
 0x502   : > { %v1396_v52 = vrot.slane %v1395_v50, 2  ;;  %v1420_v53 = vrot.slane %v1419_v51, 4 }
 0x504   : > { %v1421_v54 = vadd.f32 %v1420_v53, %v1419_v51  ;;  %v1397_v55 = vadd.f32 %v1396_v52, %v1395_v50 }
 0x506   : > { %v1422_v56 = vrot.slane %v1421_v54, 2  ;;  %v1398_v57 = vrot.slane %v1397_v55, 1 }
 0x508   : > { %v1423_v58 = vadd.f32 %v1422_v56, %v1421_v54  ;;  %v1399_v59 = vadd.f32 %v1398_v57, %v1397_v55 }
 0x50a   : > { %2598 = vpush %v1399_v59  ;;  %v1424_v60 = vrot.slane %v1423_v58, 1 }
 0x50c   : > { %v1425_v61 = vadd.f32 %v1424_v60, %v1423_v58 }
 0x50e   : > { %2600 = vpush %v1425_v61 }
 0x53b   : > { %s2599_s22 = spop %2598 }
 0x53f   : > { %s2601_s25 = spop %2600 }
 0x540   : > { %s1427_s30 = sadd.f32 %s2601_s25, %s2599_s22 }
 0x542   : > { %s1428_s17 = smul.f32 0.125, %s1427_s30 }
 0x544   : > { %v1429_v62 = vstv %s1428_s17 }
 0x545   : > { %1430 = vst [vmem:[%s3148_s4] sm:$0x1] %v1429_v62 }
 0x546 PF: > { %p1431_p4 = scmp.ne.s32.totalorder %s2892_s12, 0 }
 0x548   : > { %p1432_p8 = pnand %p1431_p4, %p387_p3 }
 0x549   : > { %v2915_v63 = vmov (!%p1432_p8), 0.0  }
 0x54a   : > { %1435 = sbr.rel (%p1432_p8) target bundleno = 1361 (0x551), region = 56  ;;  %1436 = vst [vmem:[%s3148_s4] sm:$0x1] (!%p1432_p8), %v2915_v63 }
 0x551 PF: > { %v1437_v0 = vld [vmem:[%s3121_s14] sm:$0xff]  ;;  %v1438_v1 = vld [vmem:[%s3121_s14 + $0x8] sm:$0xff]  ;;  %v3262_v2 = vld [vmem:[%s3121_s14 + $0x10] sm:$0xff]  ;;  %vm1466_vm6 = vcmask 326656   ;;  %v2916_v59 = vmov 0   ;;  %v1460_v63 = vlaneseq  ;;  %vm2079_vm8 = vcmask 7168  }
 0x552   : > { %v1442_v3 = vmul.f32 %v1437_v0, %v1437_v0  ;;  %v1443_v4 = vmul.f32 %v1438_v1, %v1438_v1  ;;  %v1474_v5 = vand.u32 4294901760, %v1437_v0  ;;  %v1477_v6 = vand.u32 4294901760, %v1438_v1  ;;  %v3265_v7 = vld [vmem:[%s3121_s14 + $0x18] sm:$0xff]  ;;  %v3268_v8 = vld [vmem:[%s3121_s14 + $0x20] sm:$0xff]  ;;  %v1464_v9 = vld [vmem:[#allocation2] sm:$0xff]  ;;  %2741 = vset.pattern.permute.xlu0 %v2916_v59  ;;  %2740 = vset.pattern.permute.xlu1 %v2916_v59  ;;  %s2303_s14 = sshll.u32 %s2892_s12, 1 }
 0x553   : > { %v1480_v10 = vand.u32 4294901760, %v3262_v2  ;;  %v1483_v11 = vand.u32 4294901760, %v3265_v7  ;;  %v1465_v12 = vld [vmem:[#allocation2 + $0x8] sm:$0xff]  ;;  %v3277_v15 = vand.u32 4294901760, %v3268_v8  ;;  %v1468_v16 = vsel %vm1466_vm6, %v1464_v9, 0  ;;  %s1458_s16 = sadd.s32 %s2888_s11, %s2303_s14  ;;  %s2124_s25 = sshll.u32 %s3148_s4, 4  ;;  %s2125_s25 = int_to_ptr.vmem [resolvable:$true] %s2124_s25 }
 0x554   : > { %v3272_v13 = vadd.f32 %v1443_v4, %v1442_v3  ;;  %v3274_v14 = vpack.c.bf16 %v1477_v6, %v1474_v5  ;;  %v1471_v18 = vsel %vm1466_vm6, %v1465_v12, 0  ;;  %v3283_v19 = vand.u32 4294901760, %v1468_v16  ;;  %s2304_s21 = sshll.u32 %s1458_s16, 7  ;;  %s2097_s16 = scalar_lea.sflag [#allocation5], %s345_s19 }
 0x555   : > { %v3280_v17 = vpack.c.bf16 %v1483_v11, %v1480_v10  ;;  %v1565_v20 = vsub.f32 %v1437_v0, %v1474_v5  ;;  %v3287_v21 = vand.u32 4294901760, %v1471_v18  ;;  %v1572_v22 = vsub.f32 %v1438_v1, %v1477_v6  ;;  %p3486_p12 = scmp.ne.s32.totalorder %s3479_s18, 0  ;;  %s2918_s11 = smov [#allocation6]  }
 0x556   : > { %2519 = vmatprep.subr.bf16.mxu1 %v3274_v14  ;;  %2543 = vmatprep.subr.bf16.mxu0 %v3274_v14  ;;  %v1579_v23 = vsub.f32 %v3262_v2, %v1480_v10  ;;  %v1586_v24 = vsub.f32 %v3265_v7, %v1483_v11  ;;  %v3294_v25 = vsub.f32 %v1468_v16, %v3283_v19  ;;  %v1461_v1 = vand.u32 127, %v1460_v63  ;;  %s2786_s10 = sshll.u32 %s2918_s11, 4  ;;  %s2787_s10 = int_to_ptr.vmem [resolvable:$false] %s2786_s10 }
 0x557   : > { %2521 = vmatpush3.bf16.msra.mxu1 %v3274_v14  ;;  %2545 = vmatpush3.bf16.msra.mxu0 %v3274_v14  ;;  %v1566_v26 = vand.u32 4294901760, %v1565_v20  ;;  %v3298_v27 = vsub.f32 %v3268_v8, %v3277_v15  ;;  %v1573_v29 = vand.u32 4294901760, %v1572_v22  ;;  %v3303_v30 = vsub.f32 %v1471_v18, %v3287_v21  ;;  %s2788_s23 = scalar_lea.vmem %s2787_s10, 32  ;;  %p2789_p7 = scmp.lt.s32.totalorder %s2125_s25, %s2787_s10 }
 0x558   : > { %2523 = vmatprep.subr.bf16.mxu1 %v3280_v17  ;;  %2547 = vmatprep.subr.bf16.mxu0 %v3280_v17  ;;  %v1580_v28 = vand.u32 4294901760, %v1579_v23  ;;  %v1587_v31 = vand.u32 4294901760, %v1586_v24  ;;  %v1545_v32 = vand.u32 4294901760, %v3294_v25  ;;  %v2534_v53 = vpack.c.bf16 %v1572_v22, %v1565_v20 }
 0x559   : > { %v1567_v33 = vsub.f32 %v1565_v20, %v1566_v26  ;;  %v1574_v34 = vsub.f32 %v1572_v22, %v1573_v29  ;;  %v1555_v35 = vand.u32 4294901760, %v3303_v30  ;;  %v1594_v40 = vand.u32 4294901760, %v3298_v27 }
 0x55a   : > { %v1581_v36 = vsub.f32 %v1579_v23, %v1580_v28  ;;  %v1546_v37 = vsub.f32 %v3294_v25, %v1545_v32  ;;  %v1588_v39 = vsub.f32 %v1586_v24, %v1587_v31  ;;  %2489 = vmatprep.mubr.f32.mxu0 %v1545_v32  ;;  %v2550_v45 = vpack.c.bf16 %v1573_v29, %v1566_v26  ;;  %v2026_v32 = vld [vmem:[%s3453_s0 + $0x8] sm:$0xff] }
 0x55b   : > { %2525 = vmatpush3.bf16.msra.mxu1 %v3280_v17  ;;  %2549 = vmatpush3.bf16.msra.mxu0 %v3280_v17  ;;  %v1568_v38 = vand.u32 4294901760, %v1567_v33  ;;  %v1575_v41 = vand.u32 4294901760, %v1574_v34  ;;  %v1556_v42 = vsub.f32 %v3303_v30, %v1555_v35  ;;  %v1595_v50 = vsub.f32 %v3298_v27, %v1594_v40 }
 0x55c   : > { %2448 = vmatprep.subr.mxu1 %v3277_v15  ;;  %2487 = vmatprep.subr.mxu0 %v3277_v15  ;;  %v1582_v43 = vand.u32 4294901760, %v1581_v36  ;;  %v1547_v44 = vand.u32 4294901760, %v1546_v37  ;;  %v1589_v46 = vand.u32 4294901760, %v1588_v39  ;;  %v2554_v51 = vpack.c.bf16 %v1587_v31, %v1580_v28 }
 0x55d   : > { %v2526_v47 = vpack.c.bf16 %v1575_v41, %v1568_v38  ;;  %v1557_v48 = vand.u32 4294901760, %v1556_v42  ;;  %v1596_v52 = vand.u32 4294901760, %v1595_v50  ;;  %v2538_v54 = vpack.c.bf16 %v1586_v24, %v1579_v23  ;;  %v2025_v23 = vld [vmem:[%s3453_s0] sm:$0xff] }
 0x55e   : > { %v2530_v49 = vpack.c.bf16 %v1589_v46, %v1582_v43  ;;  %2450 = vmatprep.mubr.f32.mxu1 %v1547_v44  ;;  %v1444_v55 = vmul.f32 %v3262_v2, %v3262_v2  ;;  %v1445_v56 = vmul.f32 %v3265_v7, %v3265_v7  ;;  %v1446_v60 = vmul.f32 %v3268_v8, %v3268_v8  ;;  %v3349_v24 = vld [vmem:[%s3134_s13] sm:$0xff] }
 0x55f   : > { %2449 = vmatpush3.msra.mxu1 %v3277_v15  ;;  %2488 = vmatpush3.msra.mxu0 %v3277_v15  ;;  %v1462_v2 = vstv %s2304_s21  ;;  %v2917_v7 = vmov 0.0   ;;  %s2782_s21 = scalar_lea.vmem %s2125_s25, 16 }
 0x560   : > { %2527 = vmatprep.subr.bf16.mxu1 %v2526_v47  ;;  %2551 = vmatprep.subr.bf16.mxu0 %v2550_v45  ;;  %v1448_v57 = vadd.f32 %v3272_v13, %v1444_v55  ;;  %v1463_v4 = vadd.s32 %v1462_v2, %v1461_v1  ;;  %p2783_p11 = scmp.ne.s32.totalorder %s2125_s25, %s2782_s21  ;;  %p2790_p10 = scmp.lt.s32.totalorder %s2788_s23, %s2782_s21 }
 0x561   : > { %2451 = vmatmul.mubr.f32.vlgmr.msra.gmra.mrb[0].mxu1 %v1557_v48  ;;  %2490 = vmatmul.mubr.f32.vlgmr.msra.gmra.mrb[0].mxu0 %v1555_v35 }
 0x562   : > { %2529 = vmatpush3.bf16.msra.mxu1 %v2526_v47  ;;  %2553 = vmatpush3.bf16.msra.mxu0 %v2550_v45  ;;  %v1449_v58 = vadd.f32 %v1448_v57, %v1445_v56  ;;  %vm2014_vm7 = vcmp.lt.s32.totalorder %v1463_v4, 300  ;;  %v2082_v47 = vld [vmem:[%s3144_s24] sm:$0xff]  ;;  %p2784_p13 = pnand %p2783_p11, %p3486_p12  ;;  %p2791_p5 = por %p2790_p10, %p2789_p7 }
 0x563   : > { %2531 = vmatprep.subr.bf16.mxu1 %v2530_v49  ;;  %2555 = vmatprep.subr.bf16.mxu0 %v2554_v51  ;;  %v2305_v9 = vsel %vm2014_vm7, 1.0, %v2917_v7 }
 0x564   : > { %2463 = vmatprep.mubr.f32.mxu1 %v3283_v19  ;;  %2502 = vmatprep.mubr.f32.mxu0 %v3283_v19  ;;  %v1450_v61 = vadd.f32 %v1449_v58, %v1446_v60  ;;  %v2017_v11 = vsub.f32 1.0, %v2305_v9  ;;  %p2785_p0 = pneg %p2784_p13 }
 0x566   : > { %2533 = vmatpush3.bf16.msra.mxu1 %v2530_v49  ;;  %2557 = vmatpush3.bf16.msra.mxu0 %v2554_v51  ;;  %v1451_v62 = vrot.slane %v1450_v61, 4  ;;  %p2792_p2 = pnand %p2791_p5, %p2785_p0 }
 0x567   : > { %2461 = vmatprep.subr.mxu1 %v1596_v52  ;;  %2500 = vmatprep.subr.mxu0 %v1594_v40 }
 0x568   : > { %v1452_v0 = vadd.f32 %v1451_v62, %v1450_v61 }
 0x56a   : > { %2462 = vmatpush3.msra.mxu1 %v1596_v52  ;;  %2501 = vmatpush3.msra.mxu0 %v1594_v40  ;;  %v1453_v3 = vrot.slane %v1452_v0, 2 }
 0x56b   : > { %2535 = vmatprep.subr.bf16.mxu1 %v2534_v53  ;;  %2559 = vmatprep.subr.bf16.mxu0 %v3274_v14 }
 0x56c   : > { %2464 = vmatmul.mubr.f32.vlgmr.msra.gmra.mrb[0].mxu1 %v3287_v21  ;;  %2503 = vmatmul.mubr.f32.vlgmr.msra.gmra.mrb[0].mxu0 %v3287_v21  ;;  %v1454_v5 = vadd.f32 %v1453_v3, %v1452_v0 }
 0x56d   : > { %2537 = vmatpush3.bf16.msra.mxu1 %v2534_v53  ;;  %2561 = vmatpush3.bf16.msra.mxu0 %v3274_v14 }
 0x56e   : > { %2539 = vmatprep.subr.bf16.mxu1 %v2538_v54  ;;  %2563 = vmatprep.subr.bf16.mxu0 %v3280_v17  ;;  %v1455_v6 = vrot.slane %v1454_v5, 1 }
 0x56f   : > { %2476 = vmatprep.mubr.f32.mxu1 %v3294_v25  ;;  %2515 = vmatprep.mubr.f32.mxu0 %v3283_v19 }
 0x570   : > { %v1456_v10 = vadd.f32 %v1455_v6, %v1454_v5 }
 0x571   : > { %2541 = vmatpush3.bf16.msra.mxu1 %v2538_v54  ;;  %2565 = vmatpush3.bf16.msra.mxu0 %v3280_v17 }
 0x572   : > { %2474 = vmatprep.subr.mxu1 %v3298_v27  ;;  %2513 = vmatprep.subr.mxu0 %v3277_v15  ;;  %v2018_v8 = vadd.f32 %v2017_v11, %v1456_v10 }
 0x574   : > { %2742 = vrsqrt.f32 %v2018_v8 }
 0x575   : > { %2475 = vmatpush3.msra.mxu1 %v3298_v27  ;;  %2514 = vmatpush3.msra.mxu0 %v3277_v15  ;;  %v3355_v27 = vld [vmem:[%s3134_s13 + $0x8] sm:$0xff] }
 0x576   : > { %2477 = vmatmul.mubr.f32.vlgmr.msra.gmra.mrb[0].mxu1 %v3303_v30  ;;  %2516 = vmatmul.mubr.f32.vlgmr.msra.gmra.mrb[0].mxu0 %v3287_v21 }
 0x57e   : > { %v2743_v13 = vpop.eup %2742 }
 0x649   : > { %v2478_v12 = vpop.f32.mrb[0].mxu1  ;;  %v2517_v14 = vpop.f32.mrb[0].mxu0 }
 0x64a   : > { %v1743_v15 = vpop.f32.mrb[1].mxu1  ;;  %v2586_v16 = vadd.f32 %v2517_v14, %v2478_v12  ;;  %v2004_v17 = vpop.f32.mrb[1].mxu0 }
 0x64b   : > { %v2587_v18 = vadd.f32 %v2004_v17, %v1743_v15 }
 0x64c   : > { %v2021_v19 = vmul.f32 %v2743_v13, %v2586_v16 }
 0x64d   : > { %v2020_v20 = vmul.f32 %v2743_v13, %v2587_v18 }
 0x64e   : > { %v2024_v22 = vsel %vm2014_vm7, %v2021_v19, -1e+30 }
 0x64f   : > { %v2023_v21 = vsel %vm2014_vm7, %v2020_v20, -1e+30 }
 0x650   : > { %2041 = vmax.xlane.f32.xlu0 %v2023_v21 }
 0x654   : > { %2043 = vmax.xlane.f32.xlu0 %v2024_v22 }
 0x66a   : > { %2028 = vperm.xlu0 %2741, %v2025_v23  }
 0x6dd   : > { %v2042_v25 = vpop.xlane.xlu0 %2041 }
 0x6de   : > { %v3352_v26 = vmax.f32 %v3349_v24, %v2042_v25 }
 0x6e0   : > { %v2049_v29 = vsub.f32 %v3349_v24, %v3352_v26  ;;  %2094 = vst.msk [vmem:[%s3134_s13] sm:$0xff] %vm2079_vm8, %v3352_v26  ;;  %2059 = vperm.xlu1 %2740, %v3352_v26  }
 0x6e1   : > { %v2044_v30 = vpop.xlane.xlu0 %2043 }
 0x6e2   : > { %v3364_v28 = vmax.f32 %v3355_v27, %v2044_v30 }
 0x6e4   : > { %v2050_v31 = vsub.f32 %v3355_v27, %v3364_v28  ;;  %2095 = vst.msk [vmem:[%s3134_s13 + $0x8] sm:$0xff] %vm2079_vm8, %v3364_v28  ;;  %2064 = vperm.xlu1 %2740, %v3364_v28   ;;  %s2308_s13 = sshll.u32 %s2892_s12, 4 }
 0x6e5   : > { %s3383_s14 = scalar_lea.hbm %s3458_s5, %s2308_s13 }
 0x6e8   : > { %2031 = vperm.xlu1 %2740, %v2026_v32  }
 0x6e9   : > { %v2029_v33 = vpop.permute.xlu0 %2028 }
 0x6ea   : > { %vm2033_vm9 = vcmp.eq.s32.totalorder %v1463_v4, %v2029_v33 }
 0x6eb   : > { %v2306_v34 = vsel %vm2033_vm9, 1.0, %v2917_v7 }
 0x6ec   : > { %v2084_v35 = vmul.f32 %v2306_v34, %v2023_v21 }
 0x6ee   : > { %2086 = vadd.xlane.f32.xlu0 %v2084_v35 }
 0x75f   : > { %v2060_v36 = vpop.permute.xlu1 %2059 }
 0x760   : > { %v2067_v38 = vsub.f32 %v2023_v21, %v2060_v36 }
 0x762   : > { %v2069_v41 = vmul.f32 1.442695, %v2067_v38 }
 0x763   : > { %v2065_v37 = vpop.permute.xlu1 %2064 }
 0x764   : > { %v2068_v39 = vsub.f32 %v2024_v22, %v2065_v37 }
 0x766   : > { %v2071_v40 = vmul.f32 1.442695, %v2068_v39 }
 0x767   : > { %v2032_v42 = vpop.permute.xlu1 %2031 }
 0x768   : > { %2744 = vpow2.f32 %v2071_v40  ;;  %vm2034_vm10 = vcmp.eq.s32.totalorder %v1463_v4, %v2032_v42 }
 0x769   : > { %2746 = vpow2.f32 %v2069_v41  ;;  %v2307_v45 = vsel %vm2034_vm10, 1.0, %v2917_v7 }
 0x76a   : > { %v2085_v46 = vmul.f32 %v2307_v45, %v2024_v22 }
 0x772   : > { %v2745_v43 = vpop.eup %2744 }
 0x773   : > { %2075 = vadd.xlane.f32.xlu1 %v2745_v43  ;;  %v2747_v44 = vpop.eup %2746 }
 0x777   : > { %2073 = vadd.xlane.f32.xlu1 %v2747_v44 }
 0x77b   : > { %2088 = vadd.xlane.f32.xlu1 %v2085_v46  ;;  %v2087_v48 = vpop.xlane.xlu0 %2086 }
 0x77c   : > { %v2090_v49 = vadd.f32 %v2087_v48, %v2082_v47 }
 0x77e   : > { %2092 = vst.msk [vmem:[%s3144_s24] sm:$0xff] %vm2079_vm8, %v2090_v49 }
 0x77f   : > { %2795 = shalt.err (!%p2792_p2)
}
 0x780   : > { %s2796_s4 = scalar_lea.hbm %s3383_s14, 16  ;;  %s2800_s22 = scalar_lea.hbm %s3458_s5, 32 }
 0x781   : > { %p2797_p3 = scmp.ne.s32.totalorder %s3383_s14, %s2796_s4  ;;  %p2801_p1 = scmp.lt.u32.totalorder %s3383_s14, %s3458_s5 }
 0x782   : > { %p2802_p4 = scmp.lt.u32.totalorder %s2800_s22, %s2796_s4  ;;  %p2804_p11 = scmp.lt.u32.totalorder %s2796_s4, %s3383_s14 }
 0x783   : > { %p2798_p9 = pnand %p2797_p3, %p3486_p12 }
 0x784   : > { %p2803_p8 = por %p2802_p4, %p2801_p1 }
 0x785   : > { %p2799_p6 = pneg %p2798_p9 }
 0x786   : > { %p2805_p13 = por %p2804_p11, %p2803_p8 }
 0x788   : > { %p2806_p0 = pnand %p2805_p13, %p2799_p6 }
 0x78a   : > { %2809 = shalt.err (!%p2806_p0)
}
 0x78b   : > { %2604 = dma.vmem_to_hbm [thread:$0]  (%p3486_p12), %s2125_s25, 16, %s3383_s14, %s2097_s16   ;;  %v2053_v50 = vmul.f32 1.442695, %v2050_v31  ;;  %v2051_v51 = vmul.f32 1.442695, %v2049_v29  ;;  %v2048_v53 = vld [vmem:[%s3139_s20 + $0x8] sm:$0xff] }
 0x78c   : > { %v2047_v57 = vld [vmem:[%s3139_s20] sm:$0xff]  ;;  %v2083_v62 = vld [vmem:[%s3144_s24 + $0x8] sm:$0xff] }
 0x78d   : > { %2748 = vpow2.f32 %v2053_v50 }
 0x78e   : > { %2750 = vpow2.f32 %v2051_v51 }
 0x797   : > { %v2749_v52 = vpop.eup %2748 }
 0x798   : > { %v2056_v54 = vmul.f32 %v2749_v52, %v2048_v53  ;;  %v2751_v55 = vpop.eup %2750 }
 0x799   : > { %v2055_v59 = vmul.f32 %v2751_v55, %v2047_v57 }
 0x800   : > { %v2076_v56 = vpop.xlane.xlu1 %2075 }
 0x801   : > { %v2078_v58 = vadd.f32 %v2076_v56, %v2056_v54 }
 0x803   : > { %2081 = vst.msk [vmem:[%s3139_s20 + $0x8] sm:$0xff] %vm2079_vm8, %v2078_v58 }
 0x804   : > { %v2074_v60 = vpop.xlane.xlu1 %2073 }
 0x805   : > { %v2077_v61 = vadd.f32 %v2074_v60, %v2055_v59 }
 0x807   : > { %2080 = vst.msk [vmem:[%s3139_s20] sm:$0xff] %vm2079_vm8, %v2077_v61 }
 0x808   : > { %v2089_v63 = vpop.xlane.xlu1 %2088 }
 0x809   : > { %v2091_v0 = vadd.f32 %v2089_v63, %v2083_v62 }
 0x80b   : > { %2093 = vst.msk [vmem:[%s3144_s24 + $0x8] sm:$0xff] %vm2079_vm8, %v2091_v0 }
 0x80c PF: > { %p2615_p12 = scmp.ge.s32.totalorder %s2904_s15, 2  ;;  %s2145_s18 = sand.u32 1, %s2864_s27  }
 0x80d   : > { %p3487_p7 = scmp.ne.s32.totalorder %s3480_s26, 0  ;;  %s2146_s25 = scalar_lea.sflag [#allocation5], %s2145_s18 }
 0x80f   : > { %p2611_p10 = pnand %p2615_p12, %p3487_p7 }
 0x811   : > { %2859 = dma.done.wait (!%p2611_p10), %s2146_s25, 16  }
 0x812   : > { %2861 = vsyncadd (!%p2611_p10), %s2146_s25, 4294967280  ;;  %s25_s15 = sadd.s32 1, %s2904_s15   ;;  %s3488_s20 = sld [smem:[#allocation14_spill]] }
 0x813   : > { %p22_p5 = scmp.ge.s32.totalorder %s25_s15, 6   ;;  %s3489_s17 = sld [smem:[#allocation9_spill]] }
 0x814   : > { %s3490_s10 = sld [smem:[#allocation15_spill]]  ;;  %s3491_s11 = sld [smem:[#allocation10_spill]] }
 0x815   : > { %s3492_s12 = sld [smem:[#allocation11_spill]]  ;;  %s3493_s13 = sld [smem:[#allocation12_spill]] }
 0x816   : > { %s3494_s14 = sld [smem:[#allocation13_spill]]  ;;  %s3495_s27 = smov %s2868_s28 }
 0x817   : > { %s3496_s28 = smov %s2872_s29  ;;  %s3498_s30 = smov %s2880_s9 }
 0x818   : > { %s3497_s29 = smov %s3488_s20  ;;  %24 = sbr.rel (!%p22_p5) target bundleno = 11 (0xb), region = 133 }
 0x819   : > { %s3499_s9 = smov %s3489_s17 }
 0x81f   :  { %2174 = vsyncpa [#allocation4], 1 }
 0x820   :  { %2176 = vsyncpa [#allocation4 + $0x1], 1 }
 0x821   :  { %2177 = vsyncpa [#allocation5], 1 }
 0x822   :  { %2179 = vsyncpa [#allocation5 + $0x1], 1 }

</bundles_post_ra>
